<compile_context>
chip_gen: v7x
topology: tpu7x:2x2x1
jax: 0.10.0
libtpu: 0.0.40
codegen_flags: <defaults>
</compile_context>

<pallas_src>
import jax
import jax.numpy as jnp
from jax import lax
from jax.experimental import pallas as pl
from jax.experimental.pallas import tpu as pltpu


def _deconv_s2_p1_k3_mxu_kernel(x_ref, m_ref, rw_ref, out_ref):
    """Transposed conv (k=3, s=2, p=1, no bias) via scatter matmuls on the MXU.

    x_ref  : (N, Cin*H, W)         f32 VMEM  input, (ci, h) folded onto sublanes
    m_ref  : (3, W, OW)            f32 VMEM  column-scatter: M[q][j,ox] = [ox == 2j+q-1]
    rw_ref : (Cout, 3, OH, Cin*H)  f32 VMEM  weight-folded row-scatter:
                                             Rw[o,q][oy, c*H+i] = sum_p w[c,o,p,q]*[oy==2i+p-1]
    out_ref: (N, Cout, OH, OW)     f32 VMEM  final interleaved output
    """
    n_batch = x_ref.shape[0]
    cout, nq = rw_ref.shape[0], rw_ref.shape[1]

    # Hoist all scatter/weight tiles once; reused across the (tiny) batch loop.
    ms = [m_ref[q] for q in range(nq)]                                   # (W, OW)
    rws = [[rw_ref[o, q] for q in range(nq)] for o in range(cout)]       # (OH, Cin*H)

    for n in range(n_batch):
        xn = x_ref[n]                                                    # (Cin*H, W)
        # Column scatter: input col j -> output col 2j+q-1 (exact 0/1 copy), MXU.
        ys = [jnp.dot(xn, ms[q], preferred_element_type=jnp.float32)
              for q in range(nq)]                                        # (Cin*H, OW)
        for o in range(cout):
            # Row scatter fused with the (ci, ky) tap reduction, MXU.
            acc = jnp.dot(rws[o][0], ys[0], preferred_element_type=jnp.float32)
            for q in range(1, nq):
                acc = acc + jnp.dot(rws[o][q], ys[q],
                                    preferred_element_type=jnp.float32)
            out_ref[n, o] = acc                                          # (OH, OW) contiguous store


def conv_transpose2d_s2_p1_k3_pallas(x, w_t):
    """nn.ConvTranspose2d(Cin, Cout, 3, stride=2, padding=1, bias=False).

    x:   (N, Cin, H, W)    float32
    w_t: (Cin, Cout, 3, 3) float32 (PyTorch ConvTranspose2d weight layout)
    returns (N, Cout, 2H-1, 2W-1)
    """
    n, cin, h, w = x.shape
    cout = w_t.shape[1]
    oh, ow = 2 * h - 1, 2 * w - 1
    f32 = jnp.float32

    # Column-scatter matrices (pure constants -> folded by XLA at compile time).
    jx = jnp.arange(w)[:, None]
    oxi = jnp.arange(ow)[None, :]
    m = jnp.stack([(oxi == 2 * jx + q - 1).astype(f32) for q in range(3)])      # (3, W, OW)

    # Row-scatter matrices folded with the deconv weights (tiny weight-only op,
    # O(Cout*3*OH*Cin*H) ~ 16K elems, done once inside the same jit).
    iy = jnp.arange(h)[None, :]
    oyi = jnp.arange(oh)[:, None]
    r = jnp.stack([(oyi == 2 * iy + p - 1).astype(f32) for p in range(3)])      # (3, OH, H)
    rw = jnp.einsum('copq,pyi->oqyci', w_t.astype(f32), r)                       # (Cout,3,OH,Cin,H)
    rw = rw.reshape(cout, 3, oh, cin * h)

    x2 = x.astype(f32).reshape(n, cin * h, w)   # free bitcast of contiguous NCHW

    vmem = pl.BlockSpec(memory_space=pltpu.MemorySpace.VMEM)
    return pl.pallas_call(
        _deconv_s2_p1_k3_mxu_kernel,
        out_shape=jax.ShapeDtypeStruct((n, cout, oh, ow), f32),
        in_specs=[vmem, vmem, vmem],
        out_specs=vmem,
    )(x2, m, rw)


@jax.jit
def model_forward(x4, w_conv_t):
    # The PyTorch forward also computes
    #   z = F.conv2d(x4, torch.randn(2, 3, 3, 3), stride=2, padding=0)
    # and discards it; it cannot affect the output, so it is removed (DCE).
    z1 = conv_transpose2d_s2_p1_k3_pallas(x4, w_conv_t)
    # F.interpolate(z1, scale_factor=[1.0, 1.0]) with default 'nearest' mode is an
    # exact identity at scale 1.0, so the module output is z1.
    return z1


if __name__ == "__main__":
    key = jax.random.PRNGKey(0)
    k1, k2 = jax.random.split(key, 2)

    # Module input: torch.randn(3, 3, 15, 15)
    x4 = jax.random.normal(k1, (3, 3, 15, 15), jnp.float32)
    # ConvTranspose2d(3, 4, 3) weight, PyTorch layout (in=3, out=4, 3, 3),
    # deterministic uniform init.
    fan = 4 * 3 * 3
    bound = 1.0 / (fan ** 0.5)
    w_conv_t = jax.random.uniform(k2, (3, 4, 3, 3), jnp.float32, -bound, bound)

    out = jax.block_until_ready(model_forward(x4, w_conv_t))
    assert out.shape == (3, 4, 29, 29), out.shape
    assert out.dtype == jnp.float32, out.dtype

    # Sanity check against XLA's dilated-conv formulation of the transposed conv.
    wf = jnp.transpose(w_conv_t, (1, 0, 2, 3))[:, :, ::-1, ::-1]
    ref = lax.conv_general_dilated(
        x4, wf, window_strides=(1, 1), padding=((1, 1), (1, 1)),
        lhs_dilation=(2, 2), dimension_numbers=("NCHW", "OIHW", "NCHW"),
        precision=lax.Precision.HIGHEST)
    assert jnp.allclose(out, ref, atol=1e-3, rtol=1e-3)

    print("KERNEL_OK")
</pallas_src>

<mosaic_0001>
module attributes {stable_mosaic.version = 11 : i64} {
  func.func @_deconv_s2_p1_k3_mxu_kernel(%arg0: memref<3x45x15xf32, #tpu.memory_space<vmem>>, %arg1: memref<3x15x29xf32, #tpu.memory_space<vmem>>, %arg2: memref<4x3x29x45xf32, #tpu.memory_space<vmem>>, %arg3: memref<3x4x29x29xf32, #tpu.memory_space<vmem>>) attributes {dimension_semantics = [], scalar_prefetch = 0 : i64, scratch_operands = 0 : i64, tpu.core_type = #tpu.core_type<tc>} {
    %c0 = arith.constant 0 : index
    %c0_0 = arith.constant 0 : index
    %c0_1 = arith.constant 0 : index
    %0 = vector.load %arg1[%c0, %c0_0, %c0_1] : memref<3x15x29xf32, #tpu.memory_space<vmem>>, vector<1x15x29xf32>
    %1 = vector.shape_cast %0 : vector<1x15x29xf32> to vector<15x29xf32>
    %c1 = arith.constant 1 : index
    %c0_2 = arith.constant 0 : index
    %c0_3 = arith.constant 0 : index
    %2 = vector.load %arg1[%c1, %c0_2, %c0_3] : memref<3x15x29xf32, #tpu.memory_space<vmem>>, vector<1x15x29xf32>
    %3 = vector.shape_cast %2 : vector<1x15x29xf32> to vector<15x29xf32>
    %c2 = arith.constant 2 : index
    %c0_4 = arith.constant 0 : index
    %c0_5 = arith.constant 0 : index
    %4 = vector.load %arg1[%c2, %c0_4, %c0_5] : memref<3x15x29xf32, #tpu.memory_space<vmem>>, vector<1x15x29xf32>
    %5 = vector.shape_cast %4 : vector<1x15x29xf32> to vector<15x29xf32>
    %c0_6 = arith.constant 0 : index
    %c0_7 = arith.constant 0 : index
    %c0_8 = arith.constant 0 : index
    %c0_9 = arith.constant 0 : index
    %6 = vector.load %arg2[%c0_6, %c0_7, %c0_8, %c0_9] : memref<4x3x29x45xf32, #tpu.memory_space<vmem>>, vector<1x1x29x45xf32>
    %7 = vector.shape_cast %6 : vector<1x1x29x45xf32> to vector<29x45xf32>
    %c0_10 = arith.constant 0 : index
    %c1_11 = arith.constant 1 : index
    %c0_12 = arith.constant 0 : index
    %c0_13 = arith.constant 0 : index
    %8 = vector.load %arg2[%c0_10, %c1_11, %c0_12, %c0_13] : memref<4x3x29x45xf32, #tpu.memory_space<vmem>>, vector<1x1x29x45xf32>
    %9 = vector.shape_cast %8 : vector<1x1x29x45xf32> to vector<29x45xf32>
    %c0_14 = arith.constant 0 : index
    %c2_15 = arith.constant 2 : index
    %c0_16 = arith.constant 0 : index
    %c0_17 = arith.constant 0 : index
    %10 = vector.load %arg2[%c0_14, %c2_15, %c0_16, %c0_17] : memref<4x3x29x45xf32, #tpu.memory_space<vmem>>, vector<1x1x29x45xf32>
    %11 = vector.shape_cast %10 : vector<1x1x29x45xf32> to vector<29x45xf32>
    %c1_18 = arith.constant 1 : index
    %c0_19 = arith.constant 0 : index
    %c0_20 = arith.constant 0 : index
    %c0_21 = arith.constant 0 : index
    %12 = vector.load %arg2[%c1_18, %c0_19, %c0_20, %c0_21] : memref<4x3x29x45xf32, #tpu.memory_space<vmem>>, vector<1x1x29x45xf32>
    %13 = vector.shape_cast %12 : vector<1x1x29x45xf32> to vector<29x45xf32>
    %c1_22 = arith.constant 1 : index
    %c1_23 = arith.constant 1 : index
    %c0_24 = arith.constant 0 : index
    %c0_25 = arith.constant 0 : index
    %14 = vector.load %arg2[%c1_22, %c1_23, %c0_24, %c0_25] : memref<4x3x29x45xf32, #tpu.memory_space<vmem>>, vector<1x1x29x45xf32>
    %15 = vector.shape_cast %14 : vector<1x1x29x45xf32> to vector<29x45xf32>
    %c1_26 = arith.constant 1 : index
    %c2_27 = arith.constant 2 : index
    %c0_28 = arith.constant 0 : index
    %c0_29 = arith.constant 0 : index
    %16 = vector.load %arg2[%c1_26, %c2_27, %c0_28, %c0_29] : memref<4x3x29x45xf32, #tpu.memory_space<vmem>>, vector<1x1x29x45xf32>
    %17 = vector.shape_cast %16 : vector<1x1x29x45xf32> to vector<29x45xf32>
    %c2_30 = arith.constant 2 : index
    %c0_31 = arith.constant 0 : index
    %c0_32 = arith.constant 0 : index
    %c0_33 = arith.constant 0 : index
    %18 = vector.load %arg2[%c2_30, %c0_31, %c0_32, %c0_33] : memref<4x3x29x45xf32, #tpu.memory_space<vmem>>, vector<1x1x29x45xf32>
    %19 = vector.shape_cast %18 : vector<1x1x29x45xf32> to vector<29x45xf32>
    %c2_34 = arith.constant 2 : index
    %c1_35 = arith.constant 1 : index
    %c0_36 = arith.constant 0 : index
    %c0_37 = arith.constant 0 : index
    %20 = vector.load %arg2[%c2_34, %c1_35, %c0_36, %c0_37] : memref<4x3x29x45xf32, #tpu.memory_space<vmem>>, vector<1x1x29x45xf32>
    %21 = vector.shape_cast %20 : vector<1x1x29x45xf32> to vector<29x45xf32>
    %c2_38 = arith.constant 2 : index
    %c2_39 = arith.constant 2 : index
    %c0_40 = arith.constant 0 : index
    %c0_41 = arith.constant 0 : index
    %22 = vector.load %arg2[%c2_38, %c2_39, %c0_40, %c0_41] : memref<4x3x29x45xf32, #tpu.memory_space<vmem>>, vector<1x1x29x45xf32>
    %23 = vector.shape_cast %22 : vector<1x1x29x45xf32> to vector<29x45xf32>
    %c3 = arith.constant 3 : index
    %c0_42 = arith.constant 0 : index
    %c0_43 = arith.constant 0 : index
    %c0_44 = arith.constant 0 : index
    %24 = vector.load %arg2[%c3, %c0_42, %c0_43, %c0_44] : memref<4x3x29x45xf32, #tpu.memory_space<vmem>>, vector<1x1x29x45xf32>
    %25 = vector.shape_cast %24 : vector<1x1x29x45xf32> to vector<29x45xf32>
    %c3_45 = arith.constant 3 : index
    %c1_46 = arith.constant 1 : index
    %c0_47 = arith.constant 0 : index
    %c0_48 = arith.constant 0 : index
    %26 = vector.load %arg2[%c3_45, %c1_46, %c0_47, %c0_48] : memref<4x3x29x45xf32, #tpu.memory_space<vmem>>, vector<1x1x29x45xf32>
    %27 = vector.shape_cast %26 : vector<1x1x29x45xf32> to vector<29x45xf32>
    %c3_49 = arith.constant 3 : index
    %c2_50 = arith.constant 2 : index
    %c0_51 = arith.constant 0 : index
    %c0_52 = arith.constant 0 : index
    %28 = vector.load %arg2[%c3_49, %c2_50, %c0_51, %c0_52] : memref<4x3x29x45xf32, #tpu.memory_space<vmem>>, vector<1x1x29x45xf32>
    %29 = vector.shape_cast %28 : vector<1x1x29x45xf32> to vector<29x45xf32>
    %c0_53 = arith.constant 0 : index
    %c0_54 = arith.constant 0 : index
    %c0_55 = arith.constant 0 : index
    %30 = vector.load %arg0[%c0_53, %c0_54, %c0_55] : memref<3x45x15xf32, #tpu.memory_space<vmem>>, vector<1x45x15xf32>
    %31 = vector.shape_cast %30 : vector<1x45x15xf32> to vector<45x15xf32>
    %cst = arith.constant dense<0.000000e+00> : vector<45x29xf32>
    %32 = tpu.matmul %31, %1, %cst {dimension_numbers = #tpu.dot_dimension_numbers<[1], [0], [0], [1], [0, 0, 1, 1], [], []>} : vector<45x15xf32>, vector<15x29xf32>, vector<45x29xf32> -> vector<45x29xf32>
    %cst_56 = arith.constant dense<0.000000e+00> : vector<45x29xf32>
    %33 = tpu.matmul %31, %3, %cst_56 {dimension_numbers = #tpu.dot_dimension_numbers<[1], [0], [0], [1], [0, 0, 1, 1], [], []>} : vector<45x15xf32>, vector<15x29xf32>, vector<45x29xf32> -> vector<45x29xf32>
    %cst_57 = arith.constant dense<0.000000e+00> : vector<45x29xf32>
    %34 = tpu.matmul %31, %5, %cst_57 {dimension_numbers = #tpu.dot_dimension_numbers<[1], [0], [0], [1], [0, 0, 1, 1], [], []>} : vector<45x15xf32>, vector<15x29xf32>, vector<45x29xf32> -> vector<45x29xf32>
    %cst_58 = arith.constant dense<0.000000e+00> : vector<29x29xf32>
    %35 = tpu.matmul %7, %32, %cst_58 {dimension_numbers = #tpu.dot_dimension_numbers<[1], [0], [0], [1], [0, 0, 1, 1], [], []>} : vector<29x45xf32>, vector<45x29xf32>, vector<29x29xf32> -> vector<29x29xf32>
    %cst_59 = arith.constant dense<0.000000e+00> : vector<29x29xf32>
    %36 = tpu.matmul %9, %33, %cst_59 {dimension_numbers = #tpu.dot_dimension_numbers<[1], [0], [0], [1], [0, 0, 1, 1], [], []>} : vector<29x45xf32>, vector<45x29xf32>, vector<29x29xf32> -> vector<29x29xf32>
    %37 = arith.addf %35, %36 : vector<29x29xf32>
    %cst_60 = arith.constant dense<0.000000e+00> : vector<29x29xf32>
    %38 = tpu.matmul %11, %34, %cst_60 {dimension_numbers = #tpu.dot_dimension_numbers<[1], [0], [0], [1], [0, 0, 1, 1], [], []>} : vector<29x45xf32>, vector<45x29xf32>, vector<29x29xf32> -> vector<29x29xf32>
    %39 = arith.addf %37, %38 : vector<29x29xf32>
    %c0_61 = arith.constant 0 : index
    %c0_62 = arith.constant 0 : index
    %c0_63 = arith.constant 0 : index
    %c0_64 = arith.constant 0 : index
    %40 = vector.load %arg3[%c0_61, %c0_62, %c0_63, %c0_64] : memref<3x4x29x29xf32, #tpu.memory_space<vmem>>, vector<1x1x29x29xf32>
    %41 = vector.shape_cast %40 : vector<1x1x29x29xf32> to vector<29x29xf32>
    %42 = vector.shape_cast %39 : vector<29x29xf32> to vector<1x1x29x29xf32>
    tpu.vector_store %arg3[%c0_61, %c0_62, %c0_63, %c0_64], %42 {strides = array<i32>} : memref<3x4x29x29xf32, #tpu.memory_space<vmem>>, vector<1x1x29x29xf32>,
    %cst_65 = arith.constant dense<0.000000e+00> : vector<29x29xf32>
    %43 = tpu.matmul %13, %32, %cst_65 {dimension_numbers = #tpu.dot_dimension_numbers<[1], [0], [0], [1], [0, 0, 1, 1], [], []>} : vector<29x45xf32>, vector<45x29xf32>, vector<29x29xf32> -> vector<29x29xf32>
    %cst_66 = arith.constant dense<0.000000e+00> : vector<29x29xf32>
    %44 = tpu.matmul %15, %33, %cst_66 {dimension_numbers = #tpu.dot_dimension_numbers<[1], [0], [0], [1], [0, 0, 1, 1], [], []>} : vector<29x45xf32>, vector<45x29xf32>, vector<29x29xf32> -> vector<29x29xf32>
    %45 = arith.addf %43, %44 : vector<29x29xf32>
    %cst_67 = arith.constant dense<0.000000e+00> : vector<29x29xf32>
    %46 = tpu.matmul %17, %34, %cst_67 {dimension_numbers = #tpu.dot_dimension_numbers<[1], [0], [0], [1], [0, 0, 1, 1], [], []>} : vector<29x45xf32>, vector<45x29xf32>, vector<29x29xf32> -> vector<29x29xf32>
    %47 = arith.addf %45, %46 : vector<29x29xf32>
    %c0_68 = arith.constant 0 : index
    %c1_69 = arith.constant 1 : index
    %c0_70 = arith.constant 0 : index
    %c0_71 = arith.constant 0 : index
    %48 = vector.load %arg3[%c0_68, %c1_69, %c0_70, %c0_71] : memref<3x4x29x29xf32, #tpu.memory_space<vmem>>, vector<1x1x29x29xf32>
    %49 = vector.shape_cast %48 : vector<1x1x29x29xf32> to vector<29x29xf32>
    %50 = vector.shape_cast %47 : vector<29x29xf32> to vector<1x1x29x29xf32>
    tpu.vector_store %arg3[%c0_68, %c1_69, %c0_70, %c0_71], %50 {strides = array<i32>} : memref<3x4x29x29xf32, #tpu.memory_space<vmem>>, vector<1x1x29x29xf32>,
    %cst_72 = arith.constant dense<0.000000e+00> : vector<29x29xf32>
    %51 = tpu.matmul %19, %32, %cst_72 {dimension_numbers = #tpu.dot_dimension_numbers<[1], [0], [0], [1], [0, 0, 1, 1], [], []>} : vector<29x45xf32>, vector<45x29xf32>, vector<29x29xf32> -> vector<29x29xf32>
    %cst_73 = arith.constant dense<0.000000e+00> : vector<29x29xf32>
    %52 = tpu.matmul %21, %33, %cst_73 {dimension_numbers = #tpu.dot_dimension_numbers<[1], [0], [0], [1], [0, 0, 1, 1], [], []>} : vector<29x45xf32>, vector<45x29xf32>, vector<29x29xf32> -> vector<29x29xf32>
    %53 = arith.addf %51, %52 : vector<29x29xf32>
    %cst_74 = arith.constant dense<0.000000e+00> : vector<29x29xf32>
    %54 = tpu.matmul %23, %34, %cst_74 {dimension_numbers = #tpu.dot_dimension_numbers<[1], [0], [0], [1], [0, 0, 1, 1], [], []>} : vector<29x45xf32>, vector<45x29xf32>, vector<29x29xf32> -> vector<29x29xf32>
    %55 = arith.addf %53, %54 : vector<29x29xf32>
    %c0_75 = arith.constant 0 : index
    %c2_76 = arith.constant 2 : index
    %c0_77 = arith.constant 0 : index
    %c0_78 = arith.constant 0 : index
    %56 = vector.load %arg3[%c0_75, %c2_76, %c0_77, %c0_78] : memref<3x4x29x29xf32, #tpu.memory_space<vmem>>, vector<1x1x29x29xf32>
    %57 = vector.shape_cast %56 : vector<1x1x29x29xf32> to vector<29x29xf32>
    %58 = vector.shape_cast %55 : vector<29x29xf32> to vector<1x1x29x29xf32>
    tpu.vector_store %arg3[%c0_75, %c2_76, %c0_77, %c0_78], %58 {strides = array<i32>} : memref<3x4x29x29xf32, #tpu.memory_space<vmem>>, vector<1x1x29x29xf32>,
    %cst_79 = arith.constant dense<0.000000e+00> : vector<29x29xf32>
    %59 = tpu.matmul %25, %32, %cst_79 {dimension_numbers = #tpu.dot_dimension_numbers<[1], [0], [0], [1], [0, 0, 1, 1], [], []>} : vector<29x45xf32>, vector<45x29xf32>, vector<29x29xf32> -> vector<29x29xf32>
    %cst_80 = arith.constant dense<0.000000e+00> : vector<29x29xf32>
    %60 = tpu.matmul %27, %33, %cst_80 {dimension_numbers = #tpu.dot_dimension_numbers<[1], [0], [0], [1], [0, 0, 1, 1], [], []>} : vector<29x45xf32>, vector<45x29xf32>, vector<29x29xf32> -> vector<29x29xf32>
    %61 = arith.addf %59, %60 : vector<29x29xf32>
    %cst_81 = arith.constant dense<0.000000e+00> : vector<29x29xf32>
    %62 = tpu.matmul %29, %34, %cst_81 {dimension_numbers = #tpu.dot_dimension_numbers<[1], [0], [0], [1], [0, 0, 1, 1], [], []>} : vector<29x45xf32>, vector<45x29xf32>, vector<29x29xf32> -> vector<29x29xf32>
    %63 = arith.addf %61, %62 : vector<29x29xf32>
    %c0_82 = arith.constant 0 : index
    %c3_83 = arith.constant 3 : index
    %c0_84 = arith.constant 0 : index
    %c0_85 = arith.constant 0 : index
    %64 = vector.load %arg3[%c0_82, %c3_83, %c0_84, %c0_85] : memref<3x4x29x29xf32, #tpu.memory_space<vmem>>, vector<1x1x29x29xf32>
    %65 = vector.shape_cast %64 : vector<1x1x29x29xf32> to vector<29x29xf32>
    %66 = vector.shape_cast %63 : vector<29x29xf32> to vector<1x1x29x29xf32>
    tpu.vector_store %arg3[%c0_82, %c3_83, %c0_84, %c0_85], %66 {strides = array<i32>} : memref<3x4x29x29xf32, #tpu.memory_space<vmem>>, vector<1x1x29x29xf32>,
    %c1_86 = arith.constant 1 : index
    %c0_87 = arith.constant 0 : index
    %c0_88 = arith.constant 0 : index
    %67 = vector.load %arg0[%c1_86, %c0_87, %c0_88] : memref<3x45x15xf32, #tpu.memory_space<vmem>>, vector<1x45x15xf32>
    %68 = vector.shape_cast %67 : vector<1x45x15xf32> to vector<45x15xf32>
    %cst_89 = arith.constant dense<0.000000e+00> : vector<45x29xf32>
    %69 = tpu.matmul %68, %1, %cst_89 {dimension_numbers = #tpu.dot_dimension_numbers<[1], [0], [0], [1], [0, 0, 1, 1], [], []>} : vector<45x15xf32>, vector<15x29xf32>, vector<45x29xf32> -> vector<45x29xf32>
    %cst_90 = arith.constant dense<0.000000e+00> : vector<45x29xf32>
    %70 = tpu.matmul %68, %3, %cst_90 {dimension_numbers = #tpu.dot_dimension_numbers<[1], [0], [0], [1], [0, 0, 1, 1], [], []>} : vector<45x15xf32>, vector<15x29xf32>, vector<45x29xf32> -> vector<45x29xf32>
    %cst_91 = arith.constant dense<0.000000e+00> : vector<45x29xf32>
    %71 = tpu.matmul %68, %5, %cst_91 {dimension_numbers = #tpu.dot_dimension_numbers<[1], [0], [0], [1], [0, 0, 1, 1], [], []>} : vector<45x15xf32>, vector<15x29xf32>, vector<45x29xf32> -> vector<45x29xf32>
    %cst_92 = arith.constant dense<0.000000e+00> : vector<29x29xf32>
    %72 = tpu.matmul %7, %69, %cst_92 {dimension_numbers = #tpu.dot_dimension_numbers<[1], [0], [0], [1], [0, 0, 1, 1], [], []>} : vector<29x45xf32>, vector<45x29xf32>, vector<29x29xf32> -> vector<29x29xf32>
    %cst_93 = arith.constant dense<0.000000e+00> : vector<29x29xf32>
    %73 = tpu.matmul %9, %70, %cst_93 {dimension_numbers = #tpu.dot_dimension_numbers<[1], [0], [0], [1], [0, 0, 1, 1], [], []>} : vector<29x45xf32>, vector<45x29xf32>, vector<29x29xf32> -> vector<29x29xf32>
    %74 = arith.addf %72, %73 : vector<29x29xf32>
    %cst_94 = arith.constant dense<0.000000e+00> : vector<29x29xf32>
    %75 = tpu.matmul %11, %71, %cst_94 {dimension_numbers = #tpu.dot_dimension_numbers<[1], [0], [0], [1], [0, 0, 1, 1], [], []>} : vector<29x45xf32>, vector<45x29xf32>, vector<29x29xf32> -> vector<29x29xf32>
    %76 = arith.addf %74, %75 : vector<29x29xf32>
    %c1_95 = arith.constant 1 : index
    %c0_96 = arith.constant 0 : index
    %c0_97 = arith.constant 0 : index
    %c0_98 = arith.constant 0 : index
    %77 = vector.load %arg3[%c1_95, %c0_96, %c0_97, %c0_98] : memref<3x4x29x29xf32, #tpu.memory_space<vmem>>, vector<1x1x29x29xf32>
    %78 = vector.shape_cast %77 : vector<1x1x29x29xf32> to vector<29x29xf32>
    %79 = vector.shape_cast %76 : vector<29x29xf32> to vector<1x1x29x29xf32>
    tpu.vector_store %arg3[%c1_95, %c0_96, %c0_97, %c0_98], %79 {strides = array<i32>} : memref<3x4x29x29xf32, #tpu.memory_space<vmem>>, vector<1x1x29x29xf32>,
    %cst_99 = arith.constant dense<0.000000e+00> : vector<29x29xf32>
    %80 = tpu.matmul %13, %69, %cst_99 {dimension_numbers = #tpu.dot_dimension_numbers<[1], [0], [0], [1], [0, 0, 1, 1], [], []>} : vector<29x45xf32>, vector<45x29xf32>, vector<29x29xf32> -> vector<29x29xf32>
    %cst_100 = arith.constant dense<0.000000e+00> : vector<29x29xf32>
    %81 = tpu.matmul %15, %70, %cst_100 {dimension_numbers = #tpu.dot_dimension_numbers<[1], [0], [0], [1], [0, 0, 1, 1], [], []>} : vector<29x45xf32>, vector<45x29xf32>, vector<29x29xf32> -> vector<29x29xf32>
    %82 = arith.addf %80, %81 : vector<29x29xf32>
    %cst_101 = arith.constant dense<0.000000e+00> : vector<29x29xf32>
    %83 = tpu.matmul %17, %71, %cst_101 {dimension_numbers = #tpu.dot_dimension_numbers<[1], [0], [0], [1], [0, 0, 1, 1], [], []>} : vector<29x45xf32>, vector<45x29xf32>, vector<29x29xf32> -> vector<29x29xf32>
    %84 = arith.addf %82, %83 : vector<29x29xf32>
    %c1_102 = arith.constant 1 : index
    %c1_103 = arith.constant 1 : index
    %c0_104 = arith.constant 0 : index
    %c0_105 = arith.constant 0 : index
    %85 = vector.load %arg3[%c1_102, %c1_103, %c0_104, %c0_105] : memref<3x4x29x29xf32, #tpu.memory_space<vmem>>, vector<1x1x29x29xf32>
    %86 = vector.shape_cast %85 : vector<1x1x29x29xf32> to vector<29x29xf32>
    %87 = vector.shape_cast %84 : vector<29x29xf32> to vector<1x1x29x29xf32>
    tpu.vector_store %arg3[%c1_102, %c1_103, %c0_104, %c0_105], %87 {strides = array<i32>} : memref<3x4x29x29xf32, #tpu.memory_space<vmem>>, vector<1x1x29x29xf32>,
    %cst_106 = arith.constant dense<0.000000e+00> : vector<29x29xf32>
    %88 = tpu.matmul %19, %69, %cst_106 {dimension_numbers = #tpu.dot_dimension_numbers<[1], [0], [0], [1], [0, 0, 1, 1], [], []>} : vector<29x45xf32>, vector<45x29xf32>, vector<29x29xf32> -> vector<29x29xf32>
    %cst_107 = arith.constant dense<0.000000e+00> : vector<29x29xf32>
    %89 = tpu.matmul %21, %70, %cst_107 {dimension_numbers = #tpu.dot_dimension_numbers<[1], [0], [0], [1], [0, 0, 1, 1], [], []>} : vector<29x45xf32>, vector<45x29xf32>, vector<29x29xf32> -> vector<29x29xf32>
    %90 = arith.addf %88, %89 : vector<29x29xf32>
    %cst_108 = arith.constant dense<0.000000e+00> : vector<29x29xf32>
    %91 = tpu.matmul %23, %71, %cst_108 {dimension_numbers = #tpu.dot_dimension_numbers<[1], [0], [0], [1], [0, 0, 1, 1], [], []>} : vector<29x45xf32>, vector<45x29xf32>, vector<29x29xf32> -> vector<29x29xf32>
    %92 = arith.addf %90, %91 : vector<29x29xf32>
    %c1_109 = arith.constant 1 : index
    %c2_110 = arith.constant 2 : index
    %c0_111 = arith.constant 0 : index
    %c0_112 = arith.constant 0 : index
    %93 = vector.load %arg3[%c1_109, %c2_110, %c0_111, %c0_112] : memref<3x4x29x29xf32, #tpu.memory_space<vmem>>, vector<1x1x29x29xf32>
    %94 = vector.shape_cast %93 : vector<1x1x29x29xf32> to vector<29x29xf32>
    %95 = vector.shape_cast %92 : vector<29x29xf32> to vector<1x1x29x29xf32>
    tpu.vector_store %arg3[%c1_109, %c2_110, %c0_111, %c0_112], %95 {strides = array<i32>} : memref<3x4x29x29xf32, #tpu.memory_space<vmem>>, vector<1x1x29x29xf32>,
    %cst_113 = arith.constant dense<0.000000e+00> : vector<29x29xf32>
    %96 = tpu.matmul %25, %69, %cst_113 {dimension_numbers = #tpu.dot_dimension_numbers<[1], [0], [0], [1], [0, 0, 1, 1], [], []>} : vector<29x45xf32>, vector<45x29xf32>, vector<29x29xf32> -> vector<29x29xf32>
    %cst_114 = arith.constant dense<0.000000e+00> : vector<29x29xf32>
    %97 = tpu.matmul %27, %70, %cst_114 {dimension_numbers = #tpu.dot_dimension_numbers<[1], [0], [0], [1], [0, 0, 1, 1], [], []>} : vector<29x45xf32>, vector<45x29xf32>, vector<29x29xf32> -> vector<29x29xf32>
    %98 = arith.addf %96, %97 : vector<29x29xf32>
    %cst_115 = arith.constant dense<0.000000e+00> : vector<29x29xf32>
    %99 = tpu.matmul %29, %71, %cst_115 {dimension_numbers = #tpu.dot_dimension_numbers<[1], [0], [0], [1], [0, 0, 1, 1], [], []>} : vector<29x45xf32>, vector<45x29xf32>, vector<29x29xf32> -> vector<29x29xf32>
    %100 = arith.addf %98, %99 : vector<29x29xf32>
    %c1_116 = arith.constant 1 : index
    %c3_117 = arith.constant 3 : index
    %c0_118 = arith.constant 0 : index
    %c0_119 = arith.constant 0 : index
    %101 = vector.load %arg3[%c1_116, %c3_117, %c0_118, %c0_119] : memref<3x4x29x29xf32, #tpu.memory_space<vmem>>, vector<1x1x29x29xf32>
    %102 = vector.shape_cast %101 : vector<1x1x29x29xf32> to vector<29x29xf32>
    %103 = vector.shape_cast %100 : vector<29x29xf32> to vector<1x1x29x29xf32>
    tpu.vector_store %arg3[%c1_116, %c3_117, %c0_118, %c0_119], %103 {strides = array<i32>} : memref<3x4x29x29xf32, #tpu.memory_space<vmem>>, vector<1x1x29x29xf32>,
    %c2_120 = arith.constant 2 : index
    %c0_121 = arith.constant 0 : index
    %c0_122 = arith.constant 0 : index
    %104 = vector.load %arg0[%c2_120, %c0_121, %c0_122] : memref<3x45x15xf32, #tpu.memory_space<vmem>>, vector<1x45x15xf32>
    %105 = vector.shape_cast %104 : vector<1x45x15xf32> to vector<45x15xf32>
    %cst_123 = arith.constant dense<0.000000e+00> : vector<45x29xf32>
    %106 = tpu.matmul %105, %1, %cst_123 {dimension_numbers = #tpu.dot_dimension_numbers<[1], [0], [0], [1], [0, 0, 1, 1], [], []>} : vector<45x15xf32>, vector<15x29xf32>, vector<45x29xf32> -> vector<45x29xf32>
    %cst_124 = arith.constant dense<0.000000e+00> : vector<45x29xf32>
    %107 = tpu.matmul %105, %3, %cst_124 {dimension_numbers = #tpu.dot_dimension_numbers<[1], [0], [0], [1], [0, 0, 1, 1], [], []>} : vector<45x15xf32>, vector<15x29xf32>, vector<45x29xf32> -> vector<45x29xf32>
    %cst_125 = arith.constant dense<0.000000e+00> : vector<45x29xf32>
    %108 = tpu.matmul %105, %5, %cst_125 {dimension_numbers = #tpu.dot_dimension_numbers<[1], [0], [0], [1], [0, 0, 1, 1], [], []>} : vector<45x15xf32>, vector<15x29xf32>, vector<45x29xf32> -> vector<45x29xf32>
    %cst_126 = arith.constant dense<0.000000e+00> : vector<29x29xf32>
    %109 = tpu.matmul %7, %106, %cst_126 {dimension_numbers = #tpu.dot_dimension_numbers<[1], [0], [0], [1], [0, 0, 1, 1], [], []>} : vector<29x45xf32>, vector<45x29xf32>, vector<29x29xf32> -> vector<29x29xf32>
    %cst_127 = arith.constant dense<0.000000e+00> : vector<29x29xf32>
    %110 = tpu.matmul %9, %107, %cst_127 {dimension_numbers = #tpu.dot_dimension_numbers<[1], [0], [0], [1], [0, 0, 1, 1], [], []>} : vector<29x45xf32>, vector<45x29xf32>, vector<29x29xf32> -> vector<29x29xf32>
    %111 = arith.addf %109, %110 : vector<29x29xf32>
    %cst_128 = arith.constant dense<0.000000e+00> : vector<29x29xf32>
    %112 = tpu.matmul %11, %108, %cst_128 {dimension_numbers = #tpu.dot_dimension_numbers<[1], [0], [0], [1], [0, 0, 1, 1], [], []>} : vector<29x45xf32>, vector<45x29xf32>, vector<29x29xf32> -> vector<29x29xf32>
    %113 = arith.addf %111, %112 : vector<29x29xf32>
    %c2_129 = arith.constant 2 : index
    %c0_130 = arith.constant 0 : index
    %c0_131 = arith.constant 0 : index
    %c0_132 = arith.constant 0 : index
    %114 = vector.load %arg3[%c2_129, %c0_130, %c0_131, %c0_132] : memref<3x4x29x29xf32, #tpu.memory_space<vmem>>, vector<1x1x29x29xf32>
    %115 = vector.shape_cast %114 : vector<1x1x29x29xf32> to vector<29x29xf32>
    %116 = vector.shape_cast %113 : vector<29x29xf32> to vector<1x1x29x29xf32>
    tpu.vector_store %arg3[%c2_129, %c0_130, %c0_131, %c0_132], %116 {strides = array<i32>} : memref<3x4x29x29xf32, #tpu.memory_space<vmem>>, vector<1x1x29x29xf32>,
    %cst_133 = arith.constant dense<0.000000e+00> : vector<29x29xf32>
    %117 = tpu.matmul %13, %106, %cst_133 {dimension_numbers = #tpu.dot_dimension_numbers<[1], [0], [0], [1], [0, 0, 1, 1], [], []>} : vector<29x45xf32>, vector<45x29xf32>, vector<29x29xf32> -> vector<29x29xf32>
    %cst_134 = arith.constant dense<0.000000e+00> : vector<29x29xf32>
    %118 = tpu.matmul %15, %107, %cst_134 {dimension_numbers = #tpu.dot_dimension_numbers<[1], [0], [0], [1], [0, 0, 1, 1], [], []>} : vector<29x45xf32>, vector<45x29xf32>, vector<29x29xf32> -> vector<29x29xf32>
    %119 = arith.addf %117, %118 : vector<29x29xf32>
    %cst_135 = arith.constant dense<0.000000e+00> : vector<29x29xf32>
    %120 = tpu.matmul %17, %108, %cst_135 {dimension_numbers = #tpu.dot_dimension_numbers<[1], [0], [0], [1], [0, 0, 1, 1], [], []>} : vector<29x45xf32>, vector<45x29xf32>, vector<29x29xf32> -> vector<29x29xf32>
    %121 = arith.addf %119, %120 : vector<29x29xf32>
    %c2_136 = arith.constant 2 : index
    %c1_137 = arith.constant 1 : index
    %c0_138 = arith.constant 0 : index
    %c0_139 = arith.constant 0 : index
    %122 = vector.load %arg3[%c2_136, %c1_137, %c0_138, %c0_139] : memref<3x4x29x29xf32, #tpu.memory_space<vmem>>, vector<1x1x29x29xf32>
    %123 = vector.shape_cast %122 : vector<1x1x29x29xf32> to vector<29x29xf32>
    %124 = vector.shape_cast %121 : vector<29x29xf32> to vector<1x1x29x29xf32>
    tpu.vector_store %arg3[%c2_136, %c1_137, %c0_138, %c0_139], %124 {strides = array<i32>} : memref<3x4x29x29xf32, #tpu.memory_space<vmem>>, vector<1x1x29x29xf32>,
    %cst_140 = arith.constant dense<0.000000e+00> : vector<29x29xf32>
    %125 = tpu.matmul %19, %106, %cst_140 {dimension_numbers = #tpu.dot_dimension_numbers<[1], [0], [0], [1], [0, 0, 1, 1], [], []>} : vector<29x45xf32>, vector<45x29xf32>, vector<29x29xf32> -> vector<29x29xf32>
    %cst_141 = arith.constant dense<0.000000e+00> : vector<29x29xf32>
    %126 = tpu.matmul %21, %107, %cst_141 {dimension_numbers = #tpu.dot_dimension_numbers<[1], [0], [0], [1], [0, 0, 1, 1], [], []>} : vector<29x45xf32>, vector<45x29xf32>, vector<29x29xf32> -> vector<29x29xf32>
    %127 = arith.addf %125, %126 : vector<29x29xf32>
    %cst_142 = arith.constant dense<0.000000e+00> : vector<29x29xf32>
    %128 = tpu.matmul %23, %108, %cst_142 {dimension_numbers = #tpu.dot_dimension_numbers<[1], [0], [0], [1], [0, 0, 1, 1], [], []>} : vector<29x45xf32>, vector<45x29xf32>, vector<29x29xf32> -> vector<29x29xf32>
    %129 = arith.addf %127, %128 : vector<29x29xf32>
    %c2_143 = arith.constant 2 : index
    %c2_144 = arith.constant 2 : index
    %c0_145 = arith.constant 0 : index
    %c0_146 = arith.constant 0 : index
    %130 = vector.load %arg3[%c2_143, %c2_144, %c0_145, %c0_146] : memref<3x4x29x29xf32, #tpu.memory_space<vmem>>, vector<1x1x29x29xf32>
    %131 = vector.shape_cast %130 : vector<1x1x29x29xf32> to vector<29x29xf32>
    %132 = vector.shape_cast %129 : vector<29x29xf32> to vector<1x1x29x29xf32>
    tpu.vector_store %arg3[%c2_143, %c2_144, %c0_145, %c0_146], %132 {strides = array<i32>} : memref<3x4x29x29xf32, #tpu.memory_space<vmem>>, vector<1x1x29x29xf32>,
    %cst_147 = arith.constant dense<0.000000e+00> : vector<29x29xf32>
    %133 = tpu.matmul %25, %106, %cst_147 {dimension_numbers = #tpu.dot_dimension_numbers<[1], [0], [0], [1], [0, 0, 1, 1], [], []>} : vector<29x45xf32>, vector<45x29xf32>, vector<29x29xf32> -> vector<29x29xf32>
    %cst_148 = arith.constant dense<0.000000e+00> : vector<29x29xf32>
    %134 = tpu.matmul %27, %107, %cst_148 {dimension_numbers = #tpu.dot_dimension_numbers<[1], [0], [0], [1], [0, 0, 1, 1], [], []>} : vector<29x45xf32>, vector<45x29xf32>, vector<29x29xf32> -> vector<29x29xf32>
    %135 = arith.addf %133, %134 : vector<29x29xf32>
    %cst_149 = arith.constant dense<0.000000e+00> : vector<29x29xf32>
    %136 = tpu.matmul %29, %108, %cst_149 {dimension_numbers = #tpu.dot_dimension_numbers<[1], [0], [0], [1], [0, 0, 1, 1], [], []>} : vector<29x45xf32>, vector<45x29xf32>, vector<29x29xf32> -> vector<29x29xf32>
    %137 = arith.addf %135, %136 : vector<29x29xf32>
    %c2_150 = arith.constant 2 : index
    %c3_151 = arith.constant 3 : index
    %c0_152 = arith.constant 0 : index
    %c0_153 = arith.constant 0 : index
    %138 = vector.load %arg3[%c2_150, %c3_151, %c0_152, %c0_153] : memref<3x4x29x29xf32, #tpu.memory_space<vmem>>, vector<1x1x29x29xf32>
    %139 = vector.shape_cast %138 : vector<1x1x29x29xf32> to vector<29x29xf32>
    %140 = vector.shape_cast %137 : vector<29x29xf32> to vector<1x1x29x29xf32>
    tpu.vector_store %arg3[%c2_150, %c3_151, %c0_152, %c0_153], %140 {strides = array<i32>} : memref<3x4x29x29xf32, #tpu.memory_space<vmem>>, vector<1x1x29x29xf32>,
    return
  }
}

</mosaic_0001>

<bundles_post_ra>
// kernel: model_forward.1
= control target key start
LH: loop header
LB: loop body
LE: loop exit
PB: predicated region body
PF: predicated region fallthrough
CT: control target
= control target key end

     0   :  { %vm106_vm0 = vcmask 1046528   ;;  %vm87_vm1 = vcmask 121856   ;;  %vm6568_vm2 = vmmov 1   ;;  %vm401_vm4 = vcmask 367616   ;;  %s7925_s1 = inlined_call_operand.vmem [shape: f32[3,15,29], index: 1, kind: input, shape index: {}]   ;;  %s7926_s0 = inlined_call_operand.vmem [shape: f32[3,45,15], index: 0, kind: input, shape index: {}]   ;;  %s7927_s2 = inlined_call_operand.vmem [shape: f32[4,3,29,45], index: 2, kind: input, shape index: {}]   ;;  %s7928_s3 = inlined_call_operand.vmem [shape: f32[3,4,29,29], index: 3, kind: output, shape index: {}]  }
   0x1   :  { %v14_v0 = vld [vmem:[%s7925_s1] sm:$0xff]  ;;  %v15_v1 = vld [vmem:[%s7925_s1 + $0x8] sm:$0x7f]  ;;  %vm6596_vm3 = vmpackc.low %vm106_vm0, %vm6568_vm2  ;;  %vm414_vm5 = vcmask 1044480   ;;  %vm707_vm7 = vcmask 236544   ;;  %vm711_vm8 = vcmask 233472  }
   0x2   :  { %v6600_v3 = vpack.c.bf16 %v15_v1, %v14_v0  ;;  %v83_v4 = vld [vmem:[%s7926_s0 + $0x10] sm:$0xff]  ;;  %v4368_v6 = vld [vmem:[%s7925_s1 + $0x18] sm:$0x7f]  ;;  %v81_v9 = vld [vmem:[%s7926_s0] sm:$0xff] }
   0x3   :  { %5153 = vmatprep.mubr.msk.f32.mxu1 %vm87_vm1, %v83_v4  ;;  %v4367_v5 = vld [vmem:[%s7925_s1 + $0x10] sm:$0xff]  ;;  %v84_v7 = vld [vmem:[%s7926_s0 + $0x18] sm:$0xff]  ;;  %v4369_v10 = vld [vmem:[%s7925_s1 + $0x20] sm:$0xff]  ;;  %5150 = vmatprep.mubr.msk.f32.mxu0 %vm87_vm1, %v81_v9 }
   0x4   :  { %6469 = vmatprep.subr.msk.bf16.mxu1 %vm6596_vm3, %v6600_v3  ;;  %v6618_v8 = vpack.c.bf16 %v4368_v6, %v4367_v5  ;;  %5913 = vmatprep.subr.msk.bf16.mxu0 %vm6596_vm3, %v6600_v3  ;;  %v4370_v11 = vld [vmem:[%s7925_s1 + $0x28] sm:$0x7f]  ;;  %v85_v12 = vld [vmem:[%s7926_s0 + $0x20] sm:$0xff]  ;;  %vm6715_vm6 = vmpackc.low %vm414_vm5, %vm6568_vm2 }
   0x5   :  { %6470 = vmatpush3.bf16.msk.msra.mxu1 %vm6596_vm3, %v6600_v3  ;;  %5916 = vmatpush3.bf16.msk.msra.mxu0 %vm6596_vm3, %v6600_v3  ;;  %v6645_v13 = vpack.c.bf16 %v4370_v11, %v4369_v10  ;;  %v82_v14 = vld [vmem:[%s7926_s0 + $0x8] sm:$0xff]  ;;  %v6681_v16 = vld [vmem:[%s7927_s2 + $0x20] sm:$0xff]  ;;  %v6754_v48 = vld [vmem:[%s7927_s2 + $0x30] sm:$0xff] }
   0x6   :  { %5919 = vmatprep.subr.msk.bf16.mxu1 %vm6596_vm3, %v6618_v8  ;;  %v86_v15 = vld [vmem:[%s7926_s0 + $0x28] sm:$0x1f]  ;;  %7935 = vst [vmem:[#allocation2_spill] sm:$0xff] %v6681_v16  ;;  %v6686_v17 = vld [vmem:[%s7927_s2 + $0x80] sm:$0xff]  ;;  %v6759_v49 = vld [vmem:[%s7927_s2 + $0x90] sm:$0xff] }
   0x7   :  { %5925 = vmatprep.subr.msk.bf16.mxu0 %vm6596_vm3, %v6645_v13  ;;  %7936 = vst [vmem:[#allocation3_spill] sm:$0xff] %v6686_v17  ;;  %v6738_v46 = vld [vmem:[%s7927_s2 + $0x28] sm:$0xff]  ;;  %v6766_v50 = vld [vmem:[%s7927_s2 + $0x38] sm:$0x1f]  ;;  %v6786_v52 = vld [vmem:[%s7927_s2] sm:$0xff] }
   0x8   :  { %5154 = vmatmul.mubr.msk.f32.vlgmr.msra.gmra.mrb[0].mxu1 %vm87_vm1, %v84_v7  ;;  %5151 = vmatmul.mubr.msk.f32.vlgmr.msra.gmra.mrb[0].mxu0 %vm87_vm1, %v82_v14  ;;  %v6743_v47 = vld [vmem:[%s7927_s2 + $0x88] sm:$0xff]  ;;  %v6771_v51 = vld [vmem:[%s7927_s2 + $0x98] sm:$0x1f]  ;;  %v6791_v53 = vld [vmem:[%s7927_s2 + $0x60] sm:$0xff] }
   0x9   :  { %5922 = vmatpush3.bf16.msk.msra.mxu1 %vm6596_vm3, %v6618_v8  ;;  %5156 = vmatprep.mubr.msk.f32.mxu1 %vm87_vm1, %v85_v12  ;;  %v6814_v54 = vld [vmem:[%s7927_s2 + $0x8] sm:$0xff]  ;;  %v6830_v56 = vld [vmem:[%s7927_s2 + $0x10] sm:$0xff]  ;;  %v6842_v58 = vld [vmem:[%s7927_s2 + $0x18] sm:$0x1f] }
   0xa   :  { %5176 = vmatprep.mubr.msk.f32.mxu0 %vm87_vm1, %v81_v9  ;;  %5928 = vmatpush3.bf16.msk.msra.mxu0 %vm6596_vm3, %v6645_v13  ;;  %v6819_v55 = vld [vmem:[%s7927_s2 + $0x68] sm:$0xff]  ;;  %v6835_v57 = vld [vmem:[%s7927_s2 + $0x70] sm:$0xff]  ;;  %v6847_v59 = vld [vmem:[%s7927_s2 + $0x78] sm:$0x1f] }
   0xb   :  { %v6862_v60 = vld [vmem:[%s7927_s2 + $0x40] sm:$0xff]  ;;  %v6890_v62 = vld [vmem:[%s7927_s2 + $0x48] sm:$0xff]  ;;  %v6906_v0 = vld [vmem:[%s7927_s2 + $0x50] sm:$0xff] }
   0xc   :  { %5157 = vmatmul.mubr.msk.f32.gmra.mrb[2].mxu1 %vm87_vm1, %v86_v15  ;;  %v6867_v61 = vld [vmem:[%s7927_s2 + $0xa0] sm:$0xff]  ;;  %v6895_v63 = vld [vmem:[%s7927_s2 + $0xa8] sm:$0xff]  ;;  %v6911_v1 = vld [vmem:[%s7927_s2 + $0xb0] sm:$0xff] }
   0xd   :  { %5163 = vmatprep.mubr.msk.f32.mxu1 %vm87_vm1, %v81_v9  ;;  %5177 = vmatmul.mubr.msk.f32.vlgmr.msra.gmra.mrb[2].mxu0 %vm87_vm1, %v82_v14  ;;  %v6923_v5 = vld [vmem:[%s7927_s2 + $0xb8] sm:$0x1f]  ;;  %v6938_v6 = vld [vmem:[%s7927_s2 + $0xe0] sm:$0xff]  ;;  %v6966_v9 = vld [vmem:[%s7927_s2 + $0xe8] sm:$0xff] }
   0xe   :  { %5179 = vmatprep.mubr.msk.f32.mxu0 %vm87_vm1, %v83_v4  ;;  %v6971_v10 = vld [vmem:[%s7927_s2 + $0x148] sm:$0xff]  ;;  %v6982_v11 = vld [vmem:[%s7927_s2 + $0xf0] sm:$0xff]  ;;  %v7941_v2 = vld [vmem:[#allocation2_spill] sm:$0xff] }
  0x10   :  { %5164 = vmatmul.mubr.msk.f32.vlgmr.msra.gmra.mrb[4].mxu1 %vm87_vm1, %v82_v14  ;;  %v6994_v14 = vld [vmem:[%s7927_s2 + $0xf8] sm:$0x1f] }
  0x11   :  { %5166 = vmatprep.mubr.msk.f32.mxu1 %vm87_vm1, %v83_v4  ;;  %5180 = vmatmul.mubr.msk.f32.gmra.mrb[4].mxu0 %vm87_vm1, %v84_v7  ;;  %v6918_v4 = vld [vmem:[%s7927_s2 + $0x58] sm:$0x1f] }
  0x12   :  { %5182 = vmatprep.mubr.msk.f32.mxu0 %vm87_vm1, %v85_v12 }
  0x14   :  { %5167 = vmatmul.mubr.msk.f32.gmra.mrb[6].mxu1 %vm87_vm1, %v84_v7  ;;  %v6943_v7 = vld [vmem:[%s7927_s2 + $0x140] sm:$0xff] }
  0x15   :  { %5169 = vmatprep.mubr.msk.f32.mxu1 %vm87_vm1, %v85_v12  ;;  %5183 = vmatmul.mubr.msk.f32.gmra.mrb[6].mxu0 %vm87_vm1, %v86_v15  ;;  %v6987_v12 = vld [vmem:[%s7927_s2 + $0x150] sm:$0xff] }
  0x16   :  { %5251 = vmatprep.mubr.msk.f32.mxu0 %vm401_vm4, %v6686_v17 }
  0x18   :  { %5170 = vmatmul.mubr.msk.f32.gmra.mrb[8].mxu1 %vm87_vm1, %v86_v15  ;;  %v6999_v15 = vld [vmem:[%s7927_s2 + $0x158] sm:$0x1f] }
  0x19   :  { %5197 = vmatprep.mubr.msk.f32.mxu1 %vm401_vm4, %v6681_v16 }
  0xdb   :  { %v5155_v18 = vpop.f32.mrb[0].mxu1  ;;  %v5152_v19 = vpop.f32.mrb[0].mxu0 }
  0xdc   :  { %v186_v20 = vpop.f32.mrb[1].mxu1  ;;  %v176_v21 = vpop.f32.mrb[1].mxu0 }
  0xdd   :  { %v6692_v22 = vpack.c.bf16 %v5155_v18, %v186_v20  ;;  %v6694_v23 = vpack.c.bf16 %v5152_v19, %v176_v21  ;;  %v7014_v18 = vld [vmem:[%s7927_s2 + $0xc0] sm:$0xff]  ;;  %v7042_v20 = vld [vmem:[%s7927_s2 + $0xc8] sm:$0xff] }
  0xde   :  { %v7019_v19 = vld [vmem:[%s7927_s2 + $0x120] sm:$0xff]  ;;  %v7047_v21 = vld [vmem:[%s7927_s2 + $0x128] sm:$0xff] }
  0xdf   :  { %v5158_v24 = vpop.f32.mrb[2].mxu1 }
  0xe0   :  { %v196_v25 = vpop.f32.mrb[3].mxu1  ;;  %v5178_v27 = vpop.f32.mrb[2].mxu0 }
  0xe1   :  { %v6696_v26 = vpack.c.bf16 %v5158_v24, %v196_v25  ;;  %v372_v28 = vpop.f32.mrb[3].mxu0  ;;  %v7070_v24 = vld [vmem:[%s7927_s2 + $0xd8] sm:$0x1f] }
  0xe2   :  { %v6698_v30 = vpack.c.bf16 %v5178_v27, %v372_v28  ;;  %v7075_v25 = vld [vmem:[%s7927_s2 + $0x138] sm:$0x1f]  ;;  %v7095_v27 = vld [vmem:[%s7927_s2 + $0x160] sm:$0xff]  ;;  %v7118_v28 = vld [vmem:[%s7927_s2 + $0x108] sm:$0xff] }
  0xe3   :  { %v5165_v29 = vpop.f32.mrb[4].mxu1 }
  0xe4   :  { %v274_v31 = vpop.f32.mrb[5].mxu1  ;;  %v5181_v33 = vpop.f32.mrb[4].mxu0 }
  0xe5   :  { %v6700_v32 = vpack.c.bf16 %v5165_v29, %v274_v31  ;;  %v382_v34 = vpop.f32.mrb[5].mxu0  ;;  %v7123_v29 = vld [vmem:[%s7927_s2 + $0x168] sm:$0xff]  ;;  %v7139_v31 = vld [vmem:[%s7927_s2 + $0x170] sm:$0xff] }
  0xe6   :  { %v6704_v36 = vpack.c.bf16 %v5181_v33, %v382_v34  ;;  %v7158_v33 = vld [vmem:[%s7927_s2 + $0x178] sm:$0x1f]  ;;  %v4508_v34 = vld [vmem:[%s7926_s0 + $0x30] sm:$0xff] }
  0xe7   :  { %v5168_v35 = vpop.f32.mrb[6].mxu1  ;;  %5930 = vmatprep.subr.bf16.mxu1 %v6700_v32  ;;  %5972 = vmatprep.subr.bf16.mxu0 %v6700_v32  ;;  %7939 = vst [vmem:[#allocation4_spill] sm:$0xff] %v7158_v33 }
  0xe8   :  { %v284_v37 = vpop.f32.mrb[7].mxu1  ;;  %5932 = vmatpush3.bf16.msra.mxu1 %v6700_v32  ;;  %5974 = vmatpush3.bf16.msra.mxu0 %v6700_v32  ;;  %v5184_v39 = vpop.f32.mrb[6].mxu0 }
  0xe9   :  { %v6708_v38 = vpack.c.bf16 %v5168_v35, %v284_v37  ;;  %v392_v40 = vpop.f32.mrb[7].mxu0  ;;  %v4509_v35 = vld [vmem:[%s7926_s0 + $0x38] sm:$0xff]  ;;  %v4511_v37 = vld [vmem:[%s7926_s0 + $0x48] sm:$0xff] }
  0xea   :  { %v6712_v42 = vpack.c.bf16 %v5184_v39, %v392_v40  ;;  %v4513_v39 = vld [vmem:[%s7926_s0 + $0x58] sm:$0x1f] }
  0xeb   :  { %v5171_v41 = vpop.f32.mrb[8].mxu1  ;;  %5934 = vmatprep.subr.bf16.mxu1 %v6708_v38  ;;  %5976 = vmatprep.subr.bf16.mxu0 %v6708_v38 }
  0xec   :  { %v294_v44 = vpop.f32.mrb[9].mxu1  ;;  %5936 = vmatpush3.bf16.msra.mxu1 %v6708_v38  ;;  %5978 = vmatpush3.bf16.msra.mxu0 %v6708_v38 }
  0xed   :  { %v6721_v45 = vpack.c.bf16 %v5171_v41, %v294_v44 }
  0xef   :  { %5939 = vmatprep.subr.msk.bf16.mxu1 %vm6715_vm6, %v6721_v45  ;;  %5981 = vmatprep.subr.msk.bf16.mxu0 %vm6715_vm6, %v6721_v45 }
  0xf0   :  { %5942 = vmatpush3.bf16.msk.msra.mxu1 %vm6715_vm6, %v6721_v45  ;;  %5984 = vmatpush3.bf16.msk.msra.mxu0 %vm6715_vm6, %v6721_v45 }
  0xf1   :  { %5944 = vmatprep.subr.bf16.mxu1 %v6694_v23  ;;  %5986 = vmatprep.subr.bf16.mxu0 %v6694_v23 }
  0xf3   :  { %5198 = vmatmul.mubr.msk.f32.vlgmr.msra.gmra.mrb[10].mxu1 %vm401_vm4, %v6738_v46  ;;  %5252 = vmatmul.mubr.msk.f32.vlgmr.msra.gmra.mrb[8].mxu0 %vm401_vm4, %v6743_v47 }
  0xf4   :  { %5946 = vmatpush3.bf16.msra.mxu1 %v6694_v23  ;;  %5988 = vmatpush3.bf16.msra.mxu0 %v6694_v23 }
  0xf5   :  { %5948 = vmatprep.subr.bf16.mxu1 %v6692_v22  ;;  %5990 = vmatprep.subr.bf16.mxu0 %v6692_v22 }
  0xf6   :  { %5200 = vmatprep.mubr.msk.f32.mxu1 %vm401_vm4, %v6754_v48  ;;  %5254 = vmatprep.mubr.msk.f32.mxu0 %vm401_vm4, %v6759_v49 }
  0xf7   :  { %5201 = vmatmul.mubr.msk.f32.gmra.mrb[12].mxu1 %vm401_vm4, %v6766_v50  ;;  %5255 = vmatmul.mubr.msk.f32.gmra.mrb[10].mxu0 %vm401_vm4, %v6771_v51 }
  0xf8   :  { %5950 = vmatpush3.bf16.msra.mxu1 %v6692_v22  ;;  %5992 = vmatpush3.bf16.msra.mxu0 %v6692_v22 }
  0xf9   :  { %5953 = vmatprep.subr.msk.bf16.mxu1 %vm6715_vm6, %v6696_v26  ;;  %5995 = vmatprep.subr.msk.bf16.mxu0 %vm6715_vm6, %v6696_v26 }
  0xfa   :  { %5215 = vmatprep.mubr.msk.f32.mxu1 %vm401_vm4, %v6786_v52  ;;  %5269 = vmatprep.mubr.msk.f32.mxu0 %vm401_vm4, %v6791_v53 }
  0xfc   :  { %5956 = vmatpush3.bf16.msk.msra.mxu1 %vm6715_vm6, %v6696_v26  ;;  %5998 = vmatpush3.bf16.msk.msra.mxu0 %vm6715_vm6, %v6696_v26 }
  0xfd   :  { %5958 = vmatprep.subr.bf16.mxu1 %v6698_v30  ;;  %6000 = vmatprep.subr.bf16.mxu0 %v6698_v30 }
  0xff   :  { %5216 = vmatmul.mubr.msk.f32.vlgmr.msra.gmra.mrb[10].mxu1 %vm401_vm4, %v6814_v54  ;;  %5270 = vmatmul.mubr.msk.f32.vlgmr.msra.gmra.mrb[8].mxu0 %vm401_vm4, %v6819_v55 }
 0x100   :  { %5960 = vmatpush3.bf16.msra.mxu1 %v6698_v30  ;;  %6002 = vmatpush3.bf16.msra.mxu0 %v6698_v30 }
 0x101   :  { %5962 = vmatprep.subr.bf16.mxu1 %v6704_v36  ;;  %6004 = vmatprep.subr.bf16.mxu0 %v6704_v36 }
 0x102   :  { %5218 = vmatprep.mubr.msk.f32.mxu1 %vm401_vm4, %v6830_v56  ;;  %5272 = vmatprep.mubr.msk.f32.mxu0 %vm401_vm4, %v6835_v57 }
 0x103   :  { %5219 = vmatmul.mubr.msk.f32.gmra.mrb[12].mxu1 %vm401_vm4, %v6842_v58  ;;  %5273 = vmatmul.mubr.msk.f32.gmra.mrb[10].mxu0 %vm401_vm4, %v6847_v59 }
 0x104   :  { %5964 = vmatpush3.bf16.msra.mxu1 %v6704_v36  ;;  %6006 = vmatpush3.bf16.msra.mxu0 %v6704_v36 }
 0x105   :  { %5967 = vmatprep.subr.msk.bf16.mxu1 %vm6715_vm6, %v6712_v42  ;;  %6009 = vmatprep.subr.msk.bf16.mxu0 %vm6715_vm6, %v6712_v42 }
 0x106   :  { %5233 = vmatprep.mubr.msk.f32.mxu1 %vm401_vm4, %v6862_v60  ;;  %5287 = vmatprep.mubr.msk.f32.mxu0 %vm401_vm4, %v6867_v61 }
 0x108   :  { %5970 = vmatpush3.bf16.msk.msra.mxu1 %vm6715_vm6, %v6712_v42  ;;  %6012 = vmatpush3.bf16.msk.msra.mxu0 %vm6715_vm6, %v6712_v42 }
 0x109   :  { %6014 = vmatprep.subr.bf16.mxu1 %v6700_v32  ;;  %6056 = vmatprep.subr.bf16.mxu0 %v6700_v32 }
 0x10b   :  { %5234 = vmatmul.mubr.msk.f32.vlgmr.msra.gmra.mrb[10].mxu1 %vm401_vm4, %v6890_v62  ;;  %5288 = vmatmul.mubr.msk.f32.vlgmr.msra.gmra.mrb[8].mxu0 %vm401_vm4, %v6895_v63 }
 0x10c   :  { %6016 = vmatpush3.bf16.msra.mxu1 %v6700_v32  ;;  %6058 = vmatpush3.bf16.msra.mxu0 %v6700_v32  ;;  %v7153_v32 = vld [vmem:[%s7927_s2 + $0x118] sm:$0x1f] }
 0x10d   :  { %6018 = vmatprep.subr.bf16.mxu1 %v6708_v38  ;;  %6060 = vmatprep.subr.bf16.mxu0 %v6708_v38 }
 0x10e   :  { %5236 = vmatprep.mubr.msk.f32.mxu1 %vm401_vm4, %v6906_v0  ;;  %5290 = vmatprep.mubr.msk.f32.mxu0 %vm401_vm4, %v6911_v1 }
 0x10f   :  { %5237 = vmatmul.mubr.msk.f32.gmra.mrb[12].mxu1 %vm401_vm4, %v6918_v4  ;;  %5291 = vmatmul.mubr.msk.f32.gmra.mrb[10].mxu0 %vm401_vm4, %v6923_v5 }
 0x110   :  { %6020 = vmatpush3.bf16.msra.mxu1 %v6708_v38  ;;  %6062 = vmatpush3.bf16.msra.mxu0 %v6708_v38  ;;  %v4512_v38 = vld [vmem:[%s7926_s0 + $0x50] sm:$0xff] }
 0x111   :  { %6023 = vmatprep.subr.msk.bf16.mxu1 %vm6715_vm6, %v6721_v45  ;;  %6065 = vmatprep.subr.msk.bf16.mxu0 %vm6715_vm6, %v6721_v45 }
 0x112   :  { %5305 = vmatprep.mubr.msk.f32.mxu1 %vm401_vm4, %v6938_v6  ;;  %5359 = vmatprep.mubr.msk.f32.mxu0 %vm401_vm4, %v6943_v7 }
 0x114   :  { %6026 = vmatpush3.bf16.msk.msra.mxu1 %vm6715_vm6, %v6721_v45  ;;  %6068 = vmatpush3.bf16.msk.msra.mxu0 %vm6715_vm6, %v6721_v45 }
 0x115   :  { %6028 = vmatprep.subr.bf16.mxu1 %v6694_v23  ;;  %6070 = vmatprep.subr.bf16.mxu0 %v6694_v23 }
 0x117   :  { %5306 = vmatmul.mubr.msk.f32.vlgmr.msra.gmra.mrb[14].mxu1 %vm401_vm4, %v6966_v9  ;;  %5360 = vmatmul.mubr.msk.f32.vlgmr.msra.gmra.mrb[12].mxu0 %vm401_vm4, %v6971_v10 }
 0x118   :  { %6030 = vmatpush3.bf16.msra.mxu1 %v6694_v23  ;;  %6072 = vmatpush3.bf16.msra.mxu0 %v6694_v23  ;;  %v7063_v23 = vld [vmem:[%s7927_s2 + $0x130] sm:$0xff] }
 0x119   :  { %6032 = vmatprep.subr.bf16.mxu1 %v6692_v22  ;;  %6074 = vmatprep.subr.bf16.mxu0 %v6692_v22 }
 0x11a   :  { %5308 = vmatprep.mubr.msk.f32.mxu1 %vm401_vm4, %v6982_v11  ;;  %5362 = vmatprep.mubr.msk.f32.mxu0 %vm401_vm4, %v6987_v12 }
 0x11b   :  { %5309 = vmatmul.mubr.msk.f32.gmra.mrb[16].mxu1 %vm401_vm4, %v6994_v14  ;;  %5363 = vmatmul.mubr.msk.f32.gmra.mrb[14].mxu0 %vm401_vm4, %v6999_v15 }
 0x11c   :  { %6034 = vmatpush3.bf16.msra.mxu1 %v6692_v22  ;;  %6076 = vmatpush3.bf16.msra.mxu0 %v6692_v22  ;;  %v7058_v22 = vld [vmem:[%s7927_s2 + $0xd0] sm:$0xff] }
 0x11d   :  { %6037 = vmatprep.subr.msk.bf16.mxu1 %vm6715_vm6, %v6696_v26  ;;  %6079 = vmatprep.subr.msk.bf16.mxu0 %vm6715_vm6, %v6696_v26 }
 0x11e   :  { %5323 = vmatprep.mubr.msk.f32.mxu1 %vm401_vm4, %v7014_v18  ;;  %5377 = vmatprep.mubr.msk.f32.mxu0 %vm401_vm4, %v7019_v19 }
 0x120   :  { %6040 = vmatpush3.bf16.msk.msra.mxu1 %vm6715_vm6, %v6696_v26  ;;  %6082 = vmatpush3.bf16.msk.msra.mxu0 %vm6715_vm6, %v6696_v26  ;;  %v7090_v26 = vld [vmem:[%s7927_s2 + $0x100] sm:$0xff] }
 0x121   :  { %6042 = vmatprep.subr.bf16.mxu1 %v6698_v30  ;;  %6084 = vmatprep.subr.bf16.mxu0 %v6698_v30 }
 0x123   :  { %5324 = vmatmul.mubr.msk.f32.vlgmr.msra.gmra.mrb[14].mxu1 %vm401_vm4, %v7042_v20  ;;  %5378 = vmatmul.mubr.msk.f32.vlgmr.msra.gmra.mrb[12].mxu0 %vm401_vm4, %v7047_v21 }
 0x124   :  { %6044 = vmatpush3.bf16.msra.mxu1 %v6698_v30  ;;  %6086 = vmatpush3.bf16.msra.mxu0 %v6698_v30  ;;  %v7131_v30 = vld [vmem:[%s7927_s2 + $0x110] sm:$0xff] }
 0x125   :  { %6046 = vmatprep.subr.bf16.mxu1 %v6704_v36  ;;  %6088 = vmatprep.subr.bf16.mxu0 %v6704_v36 }
 0x126   :  { %5326 = vmatprep.mubr.msk.f32.mxu1 %vm401_vm4, %v7058_v22  ;;  %5380 = vmatprep.mubr.msk.f32.mxu0 %vm401_vm4, %v7063_v23 }
 0x127   :  { %5327 = vmatmul.mubr.msk.f32.gmra.mrb[16].mxu1 %vm401_vm4, %v7070_v24  ;;  %5381 = vmatmul.mubr.msk.f32.gmra.mrb[14].mxu0 %vm401_vm4, %v7075_v25 }
 0x128   :  { %6048 = vmatpush3.bf16.msra.mxu1 %v6704_v36  ;;  %6090 = vmatpush3.bf16.msra.mxu0 %v6704_v36  ;;  %v4510_v36 = vld [vmem:[%s7926_s0 + $0x40] sm:$0xff] }
 0x129   :  { %6051 = vmatprep.subr.msk.bf16.mxu1 %vm6715_vm6, %v6712_v42  ;;  %6093 = vmatprep.subr.msk.bf16.mxu0 %vm6715_vm6, %v6712_v42 }
 0x12a   :  { %5341 = vmatprep.mubr.msk.f32.mxu1 %vm401_vm4, %v7090_v26  ;;  %5395 = vmatprep.mubr.msk.f32.mxu0 %vm401_vm4, %v7095_v27 }
 0x12c   :  { %6054 = vmatpush3.bf16.msk.msra.mxu1 %vm6715_vm6, %v6712_v42  ;;  %6096 = vmatpush3.bf16.msk.msra.mxu0 %vm6715_vm6, %v6712_v42 }
 0x12d   :  { %6105 = vmatprep.subr.msk.bf16.mxu0 %vm6596_vm3, %v6618_v8  ;;  %6099 = vmatprep.subr.msk.bf16.mxu1 %vm6596_vm3, %v6600_v3 }
 0x12f   :  { %5342 = vmatmul.mubr.msk.f32.vlgmr.msra.gmra.mrb[14].mxu1 %vm401_vm4, %v7118_v28  ;;  %5396 = vmatmul.mubr.msk.f32.vlgmr.msra.gmra.mrb[12].mxu0 %vm401_vm4, %v7123_v29 }
 0x130   :  { %6108 = vmatpush3.bf16.msk.msra.mxu0 %vm6596_vm3, %v6618_v8  ;;  %5344 = vmatprep.mubr.msk.f32.mxu1 %vm401_vm4, %v7131_v30 }
 0x131   :  { %5398 = vmatprep.mubr.msk.f32.mxu0 %vm401_vm4, %v7139_v31  ;;  %6102 = vmatpush3.bf16.msk.msra.mxu1 %vm6596_vm3, %v6600_v3 }
 0x132   :  { %6111 = vmatprep.subr.msk.bf16.mxu1 %vm6596_vm3, %v6645_v13 }
 0x133   :  { %5345 = vmatmul.mubr.msk.f32.gmra.mrb[16].mxu1 %vm401_vm4, %v7153_v32  ;;  %5399 = vmatmul.mubr.msk.f32.gmra.mrb[14].mxu0 %vm401_vm4, %v7158_v33 }
 0x134   :  { %5418 = vmatprep.mubr.msk.f32.mxu0 %vm87_vm1, %v4508_v34  ;;  %5405 = vmatprep.mubr.msk.f32.mxu1 %vm87_vm1, %v4508_v34 }
 0x137   :  { %5419 = vmatmul.mubr.msk.f32.vlgmr.msra.gmra.mrb[16].mxu0 %vm87_vm1, %v4509_v35  ;;  %5406 = vmatmul.mubr.msk.f32.vlgmr.msra.gmra.mrb[18].mxu1 %vm87_vm1, %v4509_v35 }
 0x138   :  { %5421 = vmatprep.mubr.msk.f32.mxu0 %vm87_vm1, %v4510_v36  ;;  %6114 = vmatpush3.bf16.msk.msra.mxu1 %vm6596_vm3, %v6645_v13 }
 0x139   :  { %5408 = vmatprep.mubr.msk.f32.mxu1 %vm87_vm1, %v4510_v36 }
 0x13b   :  { %5422 = vmatmul.mubr.msk.f32.gmra.mrb[18].mxu0 %vm87_vm1, %v4511_v37  ;;  %5409 = vmatmul.mubr.msk.f32.gmra.mrb[20].mxu1 %vm87_vm1, %v4511_v37 }
 0x13c   :  { %5424 = vmatprep.mubr.msk.f32.mxu0 %vm87_vm1, %v4512_v38  ;;  %5411 = vmatprep.mubr.msk.f32.mxu1 %vm87_vm1, %v4512_v38 }
 0x13f   :  { %5425 = vmatmul.mubr.msk.f32.gmra.mrb[20].mxu0 %vm87_vm1, %v4513_v39  ;;  %5412 = vmatmul.mubr.msk.f32.gmra.mrb[22].mxu1 %vm87_vm1, %v4513_v39 }
 0x140   :  { %5431 = vmatprep.mubr.msk.f32.mxu1 %vm87_vm1, %v4508_v34  ;;  %5452 = vmatprep.mubr.msk.f32.mxu0 %vm401_vm4, %v6681_v16 }
 0x143   :  { %5432 = vmatmul.mubr.msk.f32.vlgmr.msra.gmra.mrb[24].mxu1 %vm87_vm1, %v4509_v35 }
 0x144   :  { %5434 = vmatprep.mubr.msk.f32.mxu1 %vm87_vm1, %v4510_v36 }
 0x147   :  { %5435 = vmatmul.mubr.msk.f32.gmra.mrb[26].mxu1 %vm87_vm1, %v4511_v37 }
 0x148   :  { %5437 = vmatprep.mubr.msk.f32.mxu1 %vm87_vm1, %v4512_v38 }
 0x14b   :  { %5438 = vmatmul.mubr.msk.f32.gmra.mrb[28].mxu1 %vm87_vm1, %v4513_v39 }
 0x14c   :  { %5506 = vmatprep.mubr.msk.f32.mxu1 %vm401_vm4, %v6686_v17 }
 0x1de   :  { %v5235_v40 = vpop.f32.mrb[10].mxu1  ;;  %v5289_v41 = vpop.f32.mrb[8].mxu0 }
 0x1df   :  { %709 = vst.msk [vmem:[%s7928_s3 + $0x8] sm:$0xff] %vm707_vm7, %v5235_v40  ;;  %4467 = vst.msk [vmem:[%s7928_s3 + $0x28] sm:$0xff] %vm707_vm7, %v5289_v41  ;;  %v684_v42 = vpop.f32.mrb[11].mxu1  ;;  %v985_v44 = vpop.f32.mrb[9].mxu0 }
 0x1e0   :  { %708 = vst.msk [vmem:[%s7928_s3] sm:$0xff] %vm707_vm7, %v684_v42  ;;  %4466 = vst.msk [vmem:[%s7928_s3 + $0x20] sm:$0xff] %vm707_vm7, %v985_v44 }
 0x1e2   :  { %v5238_v45 = vpop.f32.mrb[12].mxu1  ;;  %v5292_v34 = vpop.f32.mrb[10].mxu0 }
 0x1e3   :  { %712 = vst.msk [vmem:[%s7928_s3 + $0x18] sm:$0x1f] %vm711_vm8, %v5238_v45  ;;  %4469 = vst.msk [vmem:[%s7928_s3 + $0x38] sm:$0x1f] %vm711_vm8, %v5292_v34  ;;  %v694_v35 = vpop.f32.mrb[13].mxu1  ;;  %v995_v36 = vpop.f32.mrb[11].mxu0 }
 0x1e4   :  { %710 = vst.msk [vmem:[%s7928_s3 + $0x10] sm:$0xff] %vm707_vm7, %v694_v35  ;;  %4468 = vst.msk [vmem:[%s7928_s3 + $0x30] sm:$0xff] %vm707_vm7, %v995_v36 }
 0x202   :  { %v5343_v37 = vpop.f32.mrb[14].mxu1  ;;  %v5397_v38 = vpop.f32.mrb[12].mxu0 }
 0x203   :  { %4486 = vst.msk [vmem:[%s7928_s3 + $0x48] sm:$0xff] %vm707_vm7, %v5343_v37  ;;  %4505 = vst.msk [vmem:[%s7928_s3 + $0x68] sm:$0xff] %vm707_vm7, %v5397_v38  ;;  %v1285_v39 = vpop.f32.mrb[15].mxu1  ;;  %v1585_v40 = vpop.f32.mrb[13].mxu0 }
 0x204   :  { %4485 = vst.msk [vmem:[%s7928_s3 + $0x40] sm:$0xff] %vm707_vm7, %v1285_v39  ;;  %4504 = vst.msk [vmem:[%s7928_s3 + $0x60] sm:$0xff] %vm707_vm7, %v1585_v40 }
 0x206   :  { %v5346_v41 = vpop.f32.mrb[16].mxu1  ;;  %v5400_v42 = vpop.f32.mrb[14].mxu0 }
 0x207   :  { %4488 = vst.msk [vmem:[%s7928_s3 + $0x58] sm:$0x1f] %vm711_vm8, %v5346_v41  ;;  %4507 = vst.msk [vmem:[%s7928_s3 + $0x78] sm:$0x1f] %vm711_vm8, %v5400_v42  ;;  %v1295_v44 = vpop.f32.mrb[17].mxu1  ;;  %v1595_v45 = vpop.f32.mrb[15].mxu0 }
 0x208   :  { %4487 = vst.msk [vmem:[%s7928_s3 + $0x50] sm:$0xff] %vm707_vm7, %v1295_v44  ;;  %4506 = vst.msk [vmem:[%s7928_s3 + $0x70] sm:$0xff] %vm707_vm7, %v1595_v45 }
 0x20a   :  { %v5420_v34 = vpop.f32.mrb[16].mxu0  ;;  %v5407_v35 = vpop.f32.mrb[18].mxu1 }
 0x20b   :  { %v1799_v36 = vpop.f32.mrb[17].mxu0  ;;  %v1704_v37 = vpop.f32.mrb[19].mxu1 }
 0x20c   :  { %v7279_v38 = vpack.c.bf16 %v5420_v34, %v1799_v36  ;;  %v7281_v39 = vpack.c.bf16 %v5407_v35, %v1704_v37 }
 0x20e   :  { %v5423_v40 = vpop.f32.mrb[18].mxu0  ;;  %6116 = vmatprep.subr.bf16.mxu0 %v7279_v38  ;;  %6158 = vmatprep.subr.bf16.mxu1 %v7279_v38  ;;  %v5410_v41 = vpop.f32.mrb[20].mxu1 }
 0x20f   :  { %v1809_v42 = vpop.f32.mrb[19].mxu0  ;;  %6118 = vmatpush3.bf16.msra.mxu0 %v7279_v38  ;;  %6160 = vmatpush3.bf16.msra.mxu1 %v7279_v38  ;;  %v1714_v44 = vpop.f32.mrb[21].mxu1 }
 0x210   :  { %v7287_v45 = vpack.c.bf16 %v5423_v40, %v1809_v42  ;;  %v7289_v17 = vpack.c.bf16 %v5410_v41, %v1714_v44 }
 0x212   :  { %v5426_v34 = vpop.f32.mrb[20].mxu0  ;;  %6120 = vmatprep.subr.bf16.mxu0 %v7287_v45  ;;  %6162 = vmatprep.subr.bf16.mxu1 %v7287_v45  ;;  %v5413_v35 = vpop.f32.mrb[22].mxu1 }
 0x213   :  { %v1819_v36 = vpop.f32.mrb[21].mxu0  ;;  %6122 = vmatpush3.bf16.msra.mxu0 %v7287_v45  ;;  %6164 = vmatpush3.bf16.msra.mxu1 %v7287_v45  ;;  %v1724_v37 = vpop.f32.mrb[23].mxu1 }
 0x214   :  { %v7295_v16 = vpack.c.bf16 %v5426_v34, %v1819_v36  ;;  %v7297_v33 = vpack.c.bf16 %v5413_v35, %v1724_v37 }
 0x216   :  { %6125 = vmatprep.subr.msk.bf16.mxu0 %vm6715_vm6, %v7295_v16  ;;  %6167 = vmatprep.subr.msk.bf16.mxu1 %vm6715_vm6, %v7295_v16  ;;  %v5433_v40 = vpop.f32.mrb[24].mxu1 }
 0x217   :  { %6128 = vmatpush3.bf16.msk.msra.mxu0 %vm6715_vm6, %v7295_v16  ;;  %6170 = vmatpush3.bf16.msk.msra.mxu1 %vm6715_vm6, %v7295_v16  ;;  %v1894_v41 = vpop.f32.mrb[25].mxu1 }
 0x218   :  { %6130 = vmatprep.subr.bf16.mxu0 %v7281_v39  ;;  %6172 = vmatprep.subr.bf16.mxu1 %v7281_v39  ;;  %v7313_v42 = vpack.c.bf16 %v5433_v40, %v1894_v41 }
 0x21a   :  { %5453 = vmatmul.mubr.msk.f32.vlgmr.msra.gmra.mrb[22].mxu0 %vm401_vm4, %v6738_v46  ;;  %5507 = vmatmul.mubr.msk.f32.vlgmr.msra.gmra.mrb[30].mxu1 %vm401_vm4, %v6743_v47  ;;  %v5436_v44 = vpop.f32.mrb[26].mxu1 }
 0x21b   :  { %6132 = vmatpush3.bf16.msra.mxu0 %v7281_v39  ;;  %6174 = vmatpush3.bf16.msra.mxu1 %v7281_v39  ;;  %v1904_v34 = vpop.f32.mrb[27].mxu1 }
 0x21c   :  { %6134 = vmatprep.subr.bf16.mxu0 %v7289_v17  ;;  %6176 = vmatprep.subr.bf16.mxu1 %v7289_v17  ;;  %v7323_v35 = vpack.c.bf16 %v5436_v44, %v1904_v34 }
 0x21d   :  { %5455 = vmatprep.mubr.msk.f32.mxu0 %vm401_vm4, %v6754_v48  ;;  %5509 = vmatprep.mubr.msk.f32.mxu1 %vm401_vm4, %v6759_v49 }
 0x21e   :  { %5456 = vmatmul.mubr.msk.f32.gmra.mrb[24].mxu0 %vm401_vm4, %v6766_v50  ;;  %5510 = vmatmul.mubr.msk.f32.gmra.mrb[32].mxu1 %vm401_vm4, %v6771_v51  ;;  %v5439_v36 = vpop.f32.mrb[28].mxu1 }
 0x21f   :  { %6136 = vmatpush3.bf16.msra.mxu0 %v7289_v17  ;;  %6178 = vmatpush3.bf16.msra.mxu1 %v7289_v17  ;;  %v1914_v37 = vpop.f32.mrb[29].mxu1 }
 0x220   :  { %6139 = vmatprep.subr.msk.bf16.mxu0 %vm6715_vm6, %v7297_v33  ;;  %6181 = vmatprep.subr.msk.bf16.mxu1 %vm6715_vm6, %v7297_v33  ;;  %v7341_v40 = vpack.c.bf16 %v5439_v36, %v1914_v37 }
 0x221   :  { %5470 = vmatprep.mubr.msk.f32.mxu0 %vm401_vm4, %v6786_v52  ;;  %5524 = vmatprep.mubr.msk.f32.mxu1 %vm401_vm4, %v6791_v53 }
 0x223   :  { %6142 = vmatpush3.bf16.msk.msra.mxu0 %vm6715_vm6, %v7297_v33  ;;  %6184 = vmatpush3.bf16.msk.msra.mxu1 %vm6715_vm6, %v7297_v33 }
 0x224   :  { %6144 = vmatprep.subr.bf16.mxu0 %v7313_v42  ;;  %6186 = vmatprep.subr.bf16.mxu1 %v7313_v42 }
 0x226   :  { %5471 = vmatmul.mubr.msk.f32.vlgmr.msra.gmra.mrb[22].mxu0 %vm401_vm4, %v6814_v54  ;;  %5525 = vmatmul.mubr.msk.f32.vlgmr.msra.gmra.mrb[30].mxu1 %vm401_vm4, %v6819_v55 }
 0x227   :  { %6146 = vmatpush3.bf16.msra.mxu0 %v7313_v42  ;;  %6188 = vmatpush3.bf16.msra.mxu1 %v7313_v42 }
 0x228   :  { %6148 = vmatprep.subr.bf16.mxu0 %v7323_v35  ;;  %6190 = vmatprep.subr.bf16.mxu1 %v7323_v35 }
 0x229   :  { %5473 = vmatprep.mubr.msk.f32.mxu0 %vm401_vm4, %v6830_v56  ;;  %5527 = vmatprep.mubr.msk.f32.mxu1 %vm401_vm4, %v6835_v57 }
 0x22a   :  { %5474 = vmatmul.mubr.msk.f32.gmra.mrb[24].mxu0 %vm401_vm4, %v6842_v58  ;;  %5528 = vmatmul.mubr.msk.f32.gmra.mrb[32].mxu1 %vm401_vm4, %v6847_v59 }
 0x22b   :  { %6150 = vmatpush3.bf16.msra.mxu0 %v7323_v35  ;;  %6192 = vmatpush3.bf16.msra.mxu1 %v7323_v35 }
 0x22c   :  { %6153 = vmatprep.subr.msk.bf16.mxu0 %vm6715_vm6, %v7341_v40  ;;  %6195 = vmatprep.subr.msk.bf16.mxu1 %vm6715_vm6, %v7341_v40 }
 0x22d   :  { %5488 = vmatprep.mubr.msk.f32.mxu0 %vm401_vm4, %v6862_v60  ;;  %5542 = vmatprep.mubr.msk.f32.mxu1 %vm401_vm4, %v6867_v61 }
 0x22f   :  { %6156 = vmatpush3.bf16.msk.msra.mxu0 %vm6715_vm6, %v7341_v40  ;;  %6198 = vmatpush3.bf16.msk.msra.mxu1 %vm6715_vm6, %v7341_v40 }
 0x230   :  { %6200 = vmatprep.subr.bf16.mxu0 %v7279_v38  ;;  %6242 = vmatprep.subr.bf16.mxu1 %v7279_v38 }
 0x232   :  { %5489 = vmatmul.mubr.msk.f32.vlgmr.msra.gmra.mrb[22].mxu0 %vm401_vm4, %v6890_v62  ;;  %5543 = vmatmul.mubr.msk.f32.vlgmr.msra.gmra.mrb[30].mxu1 %vm401_vm4, %v6895_v63 }
 0x233   :  { %6202 = vmatpush3.bf16.msra.mxu0 %v7279_v38  ;;  %6244 = vmatpush3.bf16.msra.mxu1 %v7279_v38  ;;  %v4615_v38 = vld [vmem:[%s7926_s0 + $0x80] sm:$0xff] }
 0x234   :  { %6204 = vmatprep.subr.bf16.mxu0 %v7287_v45  ;;  %6246 = vmatprep.subr.bf16.mxu1 %v7287_v45 }
 0x235   :  { %5491 = vmatprep.mubr.msk.f32.mxu0 %vm401_vm4, %v6906_v0  ;;  %5545 = vmatprep.mubr.msk.f32.mxu1 %vm401_vm4, %v6911_v1 }
 0x236   :  { %5492 = vmatmul.mubr.msk.f32.gmra.mrb[24].mxu0 %vm401_vm4, %v6918_v4  ;;  %5546 = vmatmul.mubr.msk.f32.gmra.mrb[32].mxu1 %vm401_vm4, %v6923_v5 }
 0x237   :  { %6206 = vmatpush3.bf16.msra.mxu0 %v7287_v45  ;;  %6248 = vmatpush3.bf16.msra.mxu1 %v7287_v45 }
 0x238   :  { %6209 = vmatprep.subr.msk.bf16.mxu0 %vm6715_vm6, %v7295_v16  ;;  %6251 = vmatprep.subr.msk.bf16.mxu1 %vm6715_vm6, %v7295_v16 }
 0x239   :  { %5560 = vmatprep.mubr.msk.f32.mxu0 %vm401_vm4, %v6938_v6  ;;  %5614 = vmatprep.mubr.msk.f32.mxu1 %vm401_vm4, %v6943_v7 }
 0x23b   :  { %6212 = vmatpush3.bf16.msk.msra.mxu0 %vm6715_vm6, %v7295_v16  ;;  %6254 = vmatpush3.bf16.msk.msra.mxu1 %vm6715_vm6, %v7295_v16  ;;  %v4611_v16 = vld [vmem:[%s7926_s0 + $0x60] sm:$0xff] }
 0x23c   :  { %6214 = vmatprep.subr.bf16.mxu0 %v7281_v39  ;;  %6256 = vmatprep.subr.bf16.mxu1 %v7281_v39 }
 0x23e   :  { %5561 = vmatmul.mubr.msk.f32.vlgmr.msra.gmra.mrb[26].mxu0 %vm401_vm4, %v6966_v9  ;;  %5615 = vmatmul.mubr.msk.f32.vlgmr.msra.gmra.mrb[34].mxu1 %vm401_vm4, %v6971_v10 }
 0x23f   :  { %6216 = vmatpush3.bf16.msra.mxu0 %v7281_v39  ;;  %6258 = vmatpush3.bf16.msra.mxu1 %v7281_v39  ;;  %v4616_v39 = vld [vmem:[%s7926_s0 + $0x88] sm:$0x1f] }
 0x240   :  { %6218 = vmatprep.subr.bf16.mxu0 %v7289_v17  ;;  %6260 = vmatprep.subr.bf16.mxu1 %v7289_v17 }
 0x241   :  { %5563 = vmatprep.mubr.msk.f32.mxu0 %vm401_vm4, %v6982_v11  ;;  %5617 = vmatprep.mubr.msk.f32.mxu1 %vm401_vm4, %v6987_v12 }
 0x242   :  { %5564 = vmatmul.mubr.msk.f32.gmra.mrb[28].mxu0 %vm401_vm4, %v6994_v14  ;;  %5618 = vmatmul.mubr.msk.f32.gmra.mrb[36].mxu1 %vm401_vm4, %v6999_v15 }
 0x243   :  { %6220 = vmatpush3.bf16.msra.mxu0 %v7289_v17  ;;  %6262 = vmatpush3.bf16.msra.mxu1 %v7289_v17  ;;  %v4612_v17 = vld [vmem:[%s7926_s0 + $0x68] sm:$0xff] }
 0x244   :  { %6223 = vmatprep.subr.msk.bf16.mxu0 %vm6715_vm6, %v7297_v33  ;;  %6265 = vmatprep.subr.msk.bf16.mxu1 %vm6715_vm6, %v7297_v33 }
 0x245   :  { %5578 = vmatprep.mubr.msk.f32.mxu0 %vm401_vm4, %v7014_v18  ;;  %5632 = vmatprep.mubr.msk.f32.mxu1 %vm401_vm4, %v7019_v19 }
 0x247   :  { %6226 = vmatpush3.bf16.msk.msra.mxu0 %vm6715_vm6, %v7297_v33  ;;  %6268 = vmatpush3.bf16.msk.msra.mxu1 %vm6715_vm6, %v7297_v33  ;;  %v4614_v33 = vld [vmem:[%s7926_s0 + $0x78] sm:$0xff] }
 0x248   :  { %6228 = vmatprep.subr.bf16.mxu0 %v7313_v42  ;;  %6270 = vmatprep.subr.bf16.mxu1 %v7313_v42 }
 0x24a   :  { %5579 = vmatmul.mubr.msk.f32.vlgmr.msra.gmra.mrb[26].mxu0 %vm401_vm4, %v7042_v20  ;;  %5633 = vmatmul.mubr.msk.f32.vlgmr.msra.gmra.mrb[34].mxu1 %vm401_vm4, %v7047_v21 }
 0x24b   :  { %6230 = vmatpush3.bf16.msra.mxu0 %v7313_v42  ;;  %6272 = vmatpush3.bf16.msra.mxu1 %v7313_v42 }
 0x24c   :  { %6232 = vmatprep.subr.bf16.mxu0 %v7323_v35  ;;  %6274 = vmatprep.subr.bf16.mxu1 %v7323_v35 }
 0x24d   :  { %5581 = vmatprep.mubr.msk.f32.mxu0 %vm401_vm4, %v7058_v22  ;;  %5635 = vmatprep.mubr.msk.f32.mxu1 %vm401_vm4, %v7063_v23 }
 0x24e   :  { %5582 = vmatmul.mubr.msk.f32.gmra.mrb[28].mxu0 %vm401_vm4, %v7070_v24  ;;  %5636 = vmatmul.mubr.msk.f32.gmra.mrb[36].mxu1 %vm401_vm4, %v7075_v25 }
 0x24f   :  { %6234 = vmatpush3.bf16.msra.mxu0 %v7323_v35  ;;  %6276 = vmatpush3.bf16.msra.mxu1 %v7323_v35 }
 0x250   :  { %6237 = vmatprep.subr.msk.bf16.mxu0 %vm6715_vm6, %v7341_v40  ;;  %6279 = vmatprep.subr.msk.bf16.mxu1 %vm6715_vm6, %v7341_v40 }
 0x251   :  { %5596 = vmatprep.mubr.msk.f32.mxu0 %vm401_vm4, %v7090_v26  ;;  %5650 = vmatprep.mubr.msk.f32.mxu1 %vm401_vm4, %v7095_v27 }
 0x253   :  { %6240 = vmatpush3.bf16.msk.msra.mxu0 %vm6715_vm6, %v7341_v40  ;;  %6282 = vmatpush3.bf16.msk.msra.mxu1 %vm6715_vm6, %v7341_v40 }
 0x254   :  { %6291 = vmatprep.subr.msk.bf16.mxu1 %vm6596_vm3, %v6618_v8  ;;  %6285 = vmatprep.subr.msk.bf16.mxu0 %vm6596_vm3, %v6600_v3 }
 0x256   :  { %5597 = vmatmul.mubr.msk.f32.vlgmr.msra.gmra.mrb[26].mxu0 %vm401_vm4, %v7118_v28  ;;  %5651 = vmatmul.mubr.msk.f32.vlgmr.msra.gmra.mrb[34].mxu1 %vm401_vm4, %v7123_v29 }
 0x257   :  { %6294 = vmatpush3.bf16.msk.msra.mxu1 %vm6596_vm3, %v6618_v8  ;;  %5599 = vmatprep.mubr.msk.f32.mxu0 %vm401_vm4, %v7131_v30  ;;  %v7940_v8 = vld [vmem:[#allocation4_spill] sm:$0xff] }
 0x258   :  { %5653 = vmatprep.mubr.msk.f32.mxu1 %vm401_vm4, %v7139_v31  ;;  %6288 = vmatpush3.bf16.msk.msra.mxu0 %vm6596_vm3, %v6600_v3  ;;  %v4613_v3 = vld [vmem:[%s7926_s0 + $0x70] sm:$0xff] }
 0x259   :  { %6297 = vmatprep.subr.msk.bf16.mxu0 %vm6596_vm3, %v6645_v13 }
 0x25a   :  { %5600 = vmatmul.mubr.msk.f32.gmra.mrb[28].mxu0 %vm401_vm4, %v7153_v32  ;;  %5654 = vmatmul.mubr.msk.f32.gmra.mrb[36].mxu1 %vm401_vm4, %v7940_v8 }
 0x25b   :  { %5673 = vmatprep.mubr.msk.f32.mxu1 %vm87_vm1, %v4611_v16  ;;  %5660 = vmatprep.mubr.msk.f32.mxu0 %vm87_vm1, %v4611_v16 }
 0x25e   :  { %5674 = vmatmul.mubr.msk.f32.vlgmr.msra.gmra.mrb[38].mxu1 %vm87_vm1, %v4612_v17  ;;  %5661 = vmatmul.mubr.msk.f32.vlgmr.msra.gmra.mrb[30].mxu0 %vm87_vm1, %v4612_v17 }
 0x25f   :  { %5676 = vmatprep.mubr.msk.f32.mxu1 %vm87_vm1, %v4613_v3  ;;  %6300 = vmatpush3.bf16.msk.msra.mxu0 %vm6596_vm3, %v6645_v13  ;;  %v7942_v13 = vld [vmem:[#allocation3_spill] sm:$0xff] }
 0x260   :  { %5663 = vmatprep.mubr.msk.f32.mxu0 %vm87_vm1, %v4613_v3 }
 0x262   :  { %5677 = vmatmul.mubr.msk.f32.gmra.mrb[40].mxu1 %vm87_vm1, %v4614_v33  ;;  %5664 = vmatmul.mubr.msk.f32.gmra.mrb[32].mxu0 %vm87_vm1, %v4614_v33 }
 0x263   :  { %5679 = vmatprep.mubr.msk.f32.mxu1 %vm87_vm1, %v4615_v38  ;;  %5666 = vmatprep.mubr.msk.f32.mxu0 %vm87_vm1, %v4615_v38 }
 0x266   :  { %5680 = vmatmul.mubr.msk.f32.gmra.mrb[42].mxu1 %vm87_vm1, %v4616_v39  ;;  %5667 = vmatmul.mubr.msk.f32.gmra.mrb[34].mxu0 %vm87_vm1, %v4616_v39 }
 0x267   :  { %5686 = vmatprep.mubr.msk.f32.mxu0 %vm87_vm1, %v4611_v16  ;;  %5707 = vmatprep.mubr.msk.f32.mxu1 %vm401_vm4, %v7941_v2 }
 0x26a   :  { %5687 = vmatmul.mubr.msk.f32.vlgmr.msra.gmra.mrb[36].mxu0 %vm87_vm1, %v4612_v17 }
 0x26b   :  { %5689 = vmatprep.mubr.msk.f32.mxu0 %vm87_vm1, %v4613_v3 }
 0x26e   :  { %5690 = vmatmul.mubr.msk.f32.gmra.mrb[38].mxu0 %vm87_vm1, %v4614_v33 }
 0x26f   :  { %5692 = vmatprep.mubr.msk.f32.mxu0 %vm87_vm1, %v4615_v38 }
 0x272   :  { %5693 = vmatmul.mubr.msk.f32.gmra.mrb[40].mxu0 %vm87_vm1, %v4616_v39 }
 0x273   :  { %5761 = vmatprep.mubr.msk.f32.mxu0 %vm401_vm4, %v7942_v13 }
 0x305   :  { %v5490_v45 = vpop.f32.mrb[22].mxu0  ;;  %v5544_v41 = vpop.f32.mrb[30].mxu1 }
 0x306   :  { %4551 = vst.msk [vmem:[%s7928_s3 + $0x88] sm:$0xff] %vm707_vm7, %v5490_v45  ;;  %4570 = vst.msk [vmem:[%s7928_s3 + $0xa8] sm:$0xff] %vm707_vm7, %v5544_v41  ;;  %v2168_v42 = vpop.f32.mrb[23].mxu0  ;;  %v2432_v44 = vpop.f32.mrb[31].mxu1 }
 0x307   :  { %4550 = vst.msk [vmem:[%s7928_s3 + $0x80] sm:$0xff] %vm707_vm7, %v2168_v42  ;;  %4569 = vst.msk [vmem:[%s7928_s3 + $0xa0] sm:$0xff] %vm707_vm7, %v2432_v44 }
 0x309   :  { %v5493_v34 = vpop.f32.mrb[24].mxu0  ;;  %v5547_v35 = vpop.f32.mrb[32].mxu1 }
 0x30a   :  { %4553 = vst.msk [vmem:[%s7928_s3 + $0x98] sm:$0x1f] %vm711_vm8, %v5493_v34  ;;  %4572 = vst.msk [vmem:[%s7928_s3 + $0xb8] sm:$0x1f] %vm711_vm8, %v5547_v35  ;;  %v2178_v36 = vpop.f32.mrb[25].mxu0  ;;  %v2442_v37 = vpop.f32.mrb[33].mxu1 }
 0x30b   :  { %4552 = vst.msk [vmem:[%s7928_s3 + $0x90] sm:$0xff] %vm707_vm7, %v2178_v36  ;;  %4571 = vst.msk [vmem:[%s7928_s3 + $0xb0] sm:$0xff] %vm707_vm7, %v2442_v37 }
 0x329   :  { %v5598_v40 = vpop.f32.mrb[26].mxu0  ;;  %v5652_v16 = vpop.f32.mrb[34].mxu1 }
 0x32a   :  { %4589 = vst.msk [vmem:[%s7928_s3 + $0xc8] sm:$0xff] %vm707_vm7, %v5598_v40  ;;  %4608 = vst.msk [vmem:[%s7928_s3 + $0xe8] sm:$0xff] %vm707_vm7, %v5652_v16  ;;  %v2696_v17 = vpop.f32.mrb[27].mxu0  ;;  %v2960_v3 = vpop.f32.mrb[35].mxu1 }
 0x32b   :  { %4588 = vst.msk [vmem:[%s7928_s3 + $0xc0] sm:$0xff] %vm707_vm7, %v2696_v17  ;;  %4607 = vst.msk [vmem:[%s7928_s3 + $0xe0] sm:$0xff] %vm707_vm7, %v2960_v3 }
 0x32d   :  { %v5601_v33 = vpop.f32.mrb[28].mxu0  ;;  %v5655_v38 = vpop.f32.mrb[36].mxu1 }
 0x32e   :  { %4591 = vst.msk [vmem:[%s7928_s3 + $0xd8] sm:$0x1f] %vm711_vm8, %v5601_v33  ;;  %4610 = vst.msk [vmem:[%s7928_s3 + $0xf8] sm:$0x1f] %vm711_vm8, %v5655_v38  ;;  %v2706_v39 = vpop.f32.mrb[29].mxu0  ;;  %v2970_v2 = vpop.f32.mrb[37].mxu1 }
 0x32f   :  { %4590 = vst.msk [vmem:[%s7928_s3 + $0xd0] sm:$0xff] %vm707_vm7, %v2706_v39  ;;  %4609 = vst.msk [vmem:[%s7928_s3 + $0xf0] sm:$0xff] %vm707_vm7, %v2970_v2 }
 0x331   :  { %v5675_v13 = vpop.f32.mrb[38].mxu1  ;;  %v5662_v45 = vpop.f32.mrb[30].mxu0 }
 0x332   :  { %v3174_v41 = vpop.f32.mrb[39].mxu1  ;;  %v3079_v42 = vpop.f32.mrb[31].mxu0 }
 0x333   :  { %v7631_v44 = vpack.c.bf16 %v5675_v13, %v3174_v41  ;;  %v7633_v34 = vpack.c.bf16 %v5662_v45, %v3079_v42 }
 0x335   :  { %v5678_v35 = vpop.f32.mrb[40].mxu1  ;;  %6302 = vmatprep.subr.bf16.mxu1 %v7631_v44  ;;  %6344 = vmatprep.subr.bf16.mxu0 %v7631_v44  ;;  %v5665_v36 = vpop.f32.mrb[32].mxu0 }
 0x336   :  { %v3184_v37 = vpop.f32.mrb[41].mxu1  ;;  %6304 = vmatpush3.bf16.msra.mxu1 %v7631_v44  ;;  %6346 = vmatpush3.bf16.msra.mxu0 %v7631_v44  ;;  %v3089_v40 = vpop.f32.mrb[33].mxu0 }
 0x337   :  { %v7639_v16 = vpack.c.bf16 %v5678_v35, %v3184_v37  ;;  %v7641_v17 = vpack.c.bf16 %v5665_v36, %v3089_v40 }
 0x339   :  { %v5681_v3 = vpop.f32.mrb[42].mxu1  ;;  %6306 = vmatprep.subr.bf16.mxu1 %v7639_v16  ;;  %6348 = vmatprep.subr.bf16.mxu0 %v7639_v16  ;;  %v5668_v33 = vpop.f32.mrb[34].mxu0 }
 0x33a   :  { %v3194_v38 = vpop.f32.mrb[43].mxu1  ;;  %6308 = vmatpush3.bf16.msra.mxu1 %v7639_v16  ;;  %6350 = vmatpush3.bf16.msra.mxu0 %v7639_v16  ;;  %v3099_v39 = vpop.f32.mrb[35].mxu0 }
 0x33b   :  { %v7647_v2 = vpack.c.bf16 %v5681_v3, %v3194_v38  ;;  %v7649_v13 = vpack.c.bf16 %v5668_v33, %v3099_v39 }
 0x33d   :  { %6311 = vmatprep.subr.msk.bf16.mxu1 %vm6715_vm6, %v7647_v2  ;;  %6353 = vmatprep.subr.msk.bf16.mxu0 %vm6715_vm6, %v7647_v2  ;;  %v5688_v45 = vpop.f32.mrb[36].mxu0 }
 0x33e   :  { %6314 = vmatpush3.bf16.msk.msra.mxu1 %vm6715_vm6, %v7647_v2  ;;  %6356 = vmatpush3.bf16.msk.msra.mxu0 %vm6715_vm6, %v7647_v2  ;;  %v3269_v41 = vpop.f32.mrb[37].mxu0 }
 0x33f   :  { %6316 = vmatprep.subr.bf16.mxu1 %v7633_v34  ;;  %6358 = vmatprep.subr.bf16.mxu0 %v7633_v34  ;;  %v7665_v42 = vpack.c.bf16 %v5688_v45, %v3269_v41 }
 0x341   :  { %5708 = vmatmul.mubr.msk.f32.vlgmr.msra.gmra.mrb[44].mxu1 %vm401_vm4, %v6738_v46  ;;  %5762 = vmatmul.mubr.msk.f32.vlgmr.msra.gmra.mrb[42].mxu0 %vm401_vm4, %v6743_v47  ;;  %v5691_v35 = vpop.f32.mrb[38].mxu0 }
 0x342   :  { %6318 = vmatpush3.bf16.msra.mxu1 %v7633_v34  ;;  %6360 = vmatpush3.bf16.msra.mxu0 %v7633_v34  ;;  %v3279_v36 = vpop.f32.mrb[39].mxu0 }
 0x343   :  { %6320 = vmatprep.subr.bf16.mxu1 %v7641_v17  ;;  %6362 = vmatprep.subr.bf16.mxu0 %v7641_v17  ;;  %v7675_v37 = vpack.c.bf16 %v5691_v35, %v3279_v36 }
 0x344   :  { %5710 = vmatprep.mubr.msk.f32.mxu1 %vm401_vm4, %v6754_v48  ;;  %5764 = vmatprep.mubr.msk.f32.mxu0 %vm401_vm4, %v6759_v49 }
 0x345   :  { %5711 = vmatmul.mubr.msk.f32.gmra.mrb[46].mxu1 %vm401_vm4, %v6766_v50  ;;  %5765 = vmatmul.mubr.msk.f32.gmra.mrb[44].mxu0 %vm401_vm4, %v6771_v51  ;;  %v5694_v46 = vpop.f32.mrb[40].mxu0 }
 0x346   :  { %6322 = vmatpush3.bf16.msra.mxu1 %v7641_v17  ;;  %6364 = vmatpush3.bf16.msra.mxu0 %v7641_v17  ;;  %v3289_v47 = vpop.f32.mrb[41].mxu0 }
 0x347   :  { %6325 = vmatprep.subr.msk.bf16.mxu1 %vm6715_vm6, %v7649_v13  ;;  %6367 = vmatprep.subr.msk.bf16.mxu0 %vm6715_vm6, %v7649_v13  ;;  %v7693_v48 = vpack.c.bf16 %v5694_v46, %v3289_v47 }
 0x348   :  { %5725 = vmatprep.mubr.msk.f32.mxu1 %vm401_vm4, %v6786_v52  ;;  %5779 = vmatprep.mubr.msk.f32.mxu0 %vm401_vm4, %v6791_v53 }
 0x34a   :  { %6328 = vmatpush3.bf16.msk.msra.mxu1 %vm6715_vm6, %v7649_v13  ;;  %6370 = vmatpush3.bf16.msk.msra.mxu0 %vm6715_vm6, %v7649_v13 }
 0x34b   :  { %6330 = vmatprep.subr.bf16.mxu1 %v7665_v42  ;;  %6372 = vmatprep.subr.bf16.mxu0 %v7665_v42 }
 0x34d   :  { %5726 = vmatmul.mubr.msk.f32.vlgmr.msra.gmra.mrb[44].mxu1 %vm401_vm4, %v6814_v54  ;;  %5780 = vmatmul.mubr.msk.f32.vlgmr.msra.gmra.mrb[42].mxu0 %vm401_vm4, %v6819_v55 }
 0x34e   :  { %6332 = vmatpush3.bf16.msra.mxu1 %v7665_v42  ;;  %6374 = vmatpush3.bf16.msra.mxu0 %v7665_v42 }
 0x34f   :  { %6334 = vmatprep.subr.bf16.mxu1 %v7675_v37  ;;  %6376 = vmatprep.subr.bf16.mxu0 %v7675_v37 }
 0x350   :  { %5728 = vmatprep.mubr.msk.f32.mxu1 %vm401_vm4, %v6830_v56  ;;  %5782 = vmatprep.mubr.msk.f32.mxu0 %vm401_vm4, %v6835_v57 }
 0x351   :  { %5729 = vmatmul.mubr.msk.f32.gmra.mrb[46].mxu1 %vm401_vm4, %v6842_v58  ;;  %5783 = vmatmul.mubr.msk.f32.gmra.mrb[44].mxu0 %vm401_vm4, %v6847_v59 }
 0x352   :  { %6336 = vmatpush3.bf16.msra.mxu1 %v7675_v37  ;;  %6378 = vmatpush3.bf16.msra.mxu0 %v7675_v37 }
 0x353   :  { %6339 = vmatprep.subr.msk.bf16.mxu1 %vm6715_vm6, %v7693_v48  ;;  %6381 = vmatprep.subr.msk.bf16.mxu0 %vm6715_vm6, %v7693_v48 }
 0x354   :  { %5743 = vmatprep.mubr.msk.f32.mxu1 %vm401_vm4, %v6862_v60  ;;  %5797 = vmatprep.mubr.msk.f32.mxu0 %vm401_vm4, %v6867_v61 }
 0x356   :  { %6342 = vmatpush3.bf16.msk.msra.mxu1 %vm6715_vm6, %v7693_v48  ;;  %6384 = vmatpush3.bf16.msk.msra.mxu0 %vm6715_vm6, %v7693_v48 }
 0x357   :  { %6386 = vmatprep.subr.bf16.mxu1 %v7631_v44  ;;  %6428 = vmatprep.subr.bf16.mxu0 %v7631_v44 }
 0x359   :  { %5744 = vmatmul.mubr.msk.f32.vlgmr.msra.gmra.mrb[44].mxu1 %vm401_vm4, %v6890_v62  ;;  %5798 = vmatmul.mubr.msk.f32.vlgmr.msra.gmra.mrb[42].mxu0 %vm401_vm4, %v6895_v63 }
 0x35a   :  { %6388 = vmatpush3.bf16.msra.mxu1 %v7631_v44  ;;  %6430 = vmatpush3.bf16.msra.mxu0 %v7631_v44 }
 0x35b   :  { %6390 = vmatprep.subr.bf16.mxu1 %v7639_v16  ;;  %6432 = vmatprep.subr.bf16.mxu0 %v7639_v16 }
 0x35c   :  { %5746 = vmatprep.mubr.msk.f32.mxu1 %vm401_vm4, %v6906_v0  ;;  %5800 = vmatprep.mubr.msk.f32.mxu0 %vm401_vm4, %v6911_v1 }
 0x35d   :  { %5747 = vmatmul.mubr.msk.f32.gmra.mrb[46].mxu1 %vm401_vm4, %v6918_v4  ;;  %5801 = vmatmul.mubr.msk.f32.gmra.mrb[44].mxu0 %vm401_vm4, %v6923_v5 }
 0x35e   :  { %6392 = vmatpush3.bf16.msra.mxu1 %v7639_v16  ;;  %6434 = vmatpush3.bf16.msra.mxu0 %v7639_v16 }
 0x35f   :  { %6395 = vmatprep.subr.msk.bf16.mxu1 %vm6715_vm6, %v7647_v2  ;;  %6437 = vmatprep.subr.msk.bf16.mxu0 %vm6715_vm6, %v7647_v2 }
 0x360   :  { %5815 = vmatprep.mubr.msk.f32.mxu1 %vm401_vm4, %v6938_v6  ;;  %5869 = vmatprep.mubr.msk.f32.mxu0 %vm401_vm4, %v6943_v7 }
 0x362   :  { %6398 = vmatpush3.bf16.msk.msra.mxu1 %vm6715_vm6, %v7647_v2  ;;  %6440 = vmatpush3.bf16.msk.msra.mxu0 %vm6715_vm6, %v7647_v2 }
 0x363   :  { %6400 = vmatprep.subr.bf16.mxu1 %v7633_v34  ;;  %6442 = vmatprep.subr.bf16.mxu0 %v7633_v34 }
 0x365   :  { %5816 = vmatmul.mubr.msk.f32.vlgmr.msra.gmra.mrb[48].mxu1 %vm401_vm4, %v6966_v9  ;;  %5870 = vmatmul.mubr.msk.f32.vlgmr.msra.gmra.mrb[46].mxu0 %vm401_vm4, %v6971_v10 }
 0x366   :  { %6402 = vmatpush3.bf16.msra.mxu1 %v7633_v34  ;;  %6444 = vmatpush3.bf16.msra.mxu0 %v7633_v34 }
 0x367   :  { %6404 = vmatprep.subr.bf16.mxu1 %v7641_v17  ;;  %6446 = vmatprep.subr.bf16.mxu0 %v7641_v17 }
 0x368   :  { %5818 = vmatprep.mubr.msk.f32.mxu1 %vm401_vm4, %v6982_v11  ;;  %5872 = vmatprep.mubr.msk.f32.mxu0 %vm401_vm4, %v6987_v12 }
 0x369   :  { %5819 = vmatmul.mubr.msk.f32.gmra.mrb[50].mxu1 %vm401_vm4, %v6994_v14  ;;  %5873 = vmatmul.mubr.msk.f32.gmra.mrb[48].mxu0 %vm401_vm4, %v6999_v15 }
 0x36a   :  { %6406 = vmatpush3.bf16.msra.mxu1 %v7641_v17  ;;  %6448 = vmatpush3.bf16.msra.mxu0 %v7641_v17 }
 0x36b   :  { %6409 = vmatprep.subr.msk.bf16.mxu1 %vm6715_vm6, %v7649_v13  ;;  %6451 = vmatprep.subr.msk.bf16.mxu0 %vm6715_vm6, %v7649_v13 }
 0x36c   :  { %5833 = vmatprep.mubr.msk.f32.mxu1 %vm401_vm4, %v7014_v18  ;;  %5887 = vmatprep.mubr.msk.f32.mxu0 %vm401_vm4, %v7019_v19 }
 0x36e   :  { %6412 = vmatpush3.bf16.msk.msra.mxu1 %vm6715_vm6, %v7649_v13  ;;  %6454 = vmatpush3.bf16.msk.msra.mxu0 %vm6715_vm6, %v7649_v13 }
 0x36f   :  { %6414 = vmatprep.subr.bf16.mxu1 %v7665_v42  ;;  %6456 = vmatprep.subr.bf16.mxu0 %v7665_v42 }
 0x371   :  { %5834 = vmatmul.mubr.msk.f32.vlgmr.msra.gmra.mrb[48].mxu1 %vm401_vm4, %v7042_v20  ;;  %5888 = vmatmul.mubr.msk.f32.vlgmr.msra.gmra.mrb[46].mxu0 %vm401_vm4, %v7047_v21 }
 0x372   :  { %6416 = vmatpush3.bf16.msra.mxu1 %v7665_v42  ;;  %6458 = vmatpush3.bf16.msra.mxu0 %v7665_v42 }
 0x373   :  { %6418 = vmatprep.subr.bf16.mxu1 %v7675_v37  ;;  %6460 = vmatprep.subr.bf16.mxu0 %v7675_v37 }
 0x374   :  { %5836 = vmatprep.mubr.msk.f32.mxu1 %vm401_vm4, %v7058_v22  ;;  %5890 = vmatprep.mubr.msk.f32.mxu0 %vm401_vm4, %v7063_v23 }
 0x375   :  { %5837 = vmatmul.mubr.msk.f32.gmra.mrb[50].mxu1 %vm401_vm4, %v7070_v24  ;;  %5891 = vmatmul.mubr.msk.f32.gmra.mrb[48].mxu0 %vm401_vm4, %v7075_v25 }
 0x376   :  { %6420 = vmatpush3.bf16.msra.mxu1 %v7675_v37  ;;  %6462 = vmatpush3.bf16.msra.mxu0 %v7675_v37 }
 0x377   :  { %6423 = vmatprep.subr.msk.bf16.mxu1 %vm6715_vm6, %v7693_v48  ;;  %6465 = vmatprep.subr.msk.bf16.mxu0 %vm6715_vm6, %v7693_v48 }
 0x378   :  { %5851 = vmatprep.mubr.msk.f32.mxu1 %vm401_vm4, %v7090_v26  ;;  %5905 = vmatprep.mubr.msk.f32.mxu0 %vm401_vm4, %v7095_v27 }
 0x37a   :  { %6426 = vmatpush3.bf16.msk.msra.mxu1 %vm6715_vm6, %v7693_v48  ;;  %6468 = vmatpush3.bf16.msk.msra.mxu0 %vm6715_vm6, %v7693_v48 }
 0x37d   :  { %5852 = vmatmul.mubr.msk.f32.vlgmr.msra.gmra.mrb[48].mxu1 %vm401_vm4, %v7118_v28  ;;  %5906 = vmatmul.mubr.msk.f32.vlgmr.msra.gmra.mrb[46].mxu0 %vm401_vm4, %v7123_v29 }
 0x37e   :  { %5854 = vmatprep.mubr.msk.f32.mxu1 %vm401_vm4, %v7131_v30  ;;  %5908 = vmatprep.mubr.msk.f32.mxu0 %vm401_vm4, %v7139_v31 }
 0x381   :  { %5855 = vmatmul.mubr.msk.f32.gmra.mrb[50].mxu1 %vm401_vm4, %v7153_v32  ;;  %5909 = vmatmul.mubr.msk.f32.gmra.mrb[48].mxu0 %vm401_vm4, %v7940_v8 }
 0x42c   :  { %v5745_v43 = vpop.f32.mrb[44].mxu1  ;;  %v5799_v49 = vpop.f32.mrb[42].mxu0 }
 0x42d   :  { %4654 = vst.msk [vmem:[%s7928_s3 + $0x108] sm:$0xff] %vm707_vm7, %v5745_v43  ;;  %4673 = vst.msk [vmem:[%s7928_s3 + $0x128] sm:$0xff] %vm707_vm7, %v5799_v49  ;;  %v3543_v50 = vpop.f32.mrb[45].mxu1  ;;  %v3807_v51 = vpop.f32.mrb[43].mxu0 }
 0x42e   :  { %4653 = vst.msk [vmem:[%s7928_s3 + $0x100] sm:$0xff] %vm707_vm7, %v3543_v50  ;;  %4672 = vst.msk [vmem:[%s7928_s3 + $0x120] sm:$0xff] %vm707_vm7, %v3807_v51 }
 0x430   :  { %v5748_v52 = vpop.f32.mrb[46].mxu1  ;;  %v5802_v53 = vpop.f32.mrb[44].mxu0 }
 0x431   :  { %4656 = vst.msk [vmem:[%s7928_s3 + $0x118] sm:$0x1f] %vm711_vm8, %v5748_v52  ;;  %4675 = vst.msk [vmem:[%s7928_s3 + $0x138] sm:$0x1f] %vm711_vm8, %v5802_v53  ;;  %v3553_v54 = vpop.f32.mrb[47].mxu1  ;;  %v3817_v55 = vpop.f32.mrb[45].mxu0 }
 0x432   :  { %4655 = vst.msk [vmem:[%s7928_s3 + $0x110] sm:$0xff] %vm707_vm7, %v3553_v54  ;;  %4674 = vst.msk [vmem:[%s7928_s3 + $0x130] sm:$0xff] %vm707_vm7, %v3817_v55 }
 0x450   :  { %v5853_v56 = vpop.f32.mrb[48].mxu1  ;;  %v5907_v57 = vpop.f32.mrb[46].mxu0 }
 0x451   :  { %4692 = vst.msk [vmem:[%s7928_s3 + $0x148] sm:$0xff] %vm707_vm7, %v5853_v56  ;;  %4711 = vst.msk [vmem:[%s7928_s3 + $0x168] sm:$0xff] %vm707_vm7, %v5907_v57  ;;  %v4071_v58 = vpop.f32.mrb[49].mxu1  ;;  %v4335_v59 = vpop.f32.mrb[47].mxu0 }
 0x452   :  { %4691 = vst.msk [vmem:[%s7928_s3 + $0x140] sm:$0xff] %vm707_vm7, %v4071_v58  ;;  %4710 = vst.msk [vmem:[%s7928_s3 + $0x160] sm:$0xff] %vm707_vm7, %v4335_v59 }
 0x454   :  { %v5856_v60 = vpop.f32.mrb[50].mxu1  ;;  %v5910_v61 = vpop.f32.mrb[48].mxu0 }
 0x455   :  { %4694 = vst.msk [vmem:[%s7928_s3 + $0x158] sm:$0x1f] %vm711_vm8, %v5856_v60  ;;  %4713 = vst.msk [vmem:[%s7928_s3 + $0x178] sm:$0x1f] %vm711_vm8, %v5910_v61  ;;  %v4081_v62 = vpop.f32.mrb[51].mxu1  ;;  %v4345_v63 = vpop.f32.mrb[49].mxu0 }
 0x456   :  { %4693 = vst.msk [vmem:[%s7928_s3 + $0x150] sm:$0xff] %vm707_vm7, %v4081_v62  ;;  %4712 = vst.msk [vmem:[%s7928_s3 + $0x170] sm:$0xff] %vm707_vm7, %v4345_v63 }

</bundles_post_ra>
